<compile_context>
chip_gen: v7x
topology: tpu7x:2x2x1
jax: 0.10.0
libtpu: 0.0.40
codegen_flags: <defaults>
</compile_context>

<pallas_src>
import functools

import jax
import jax.numpy as jnp
from jax.experimental import pallas as pl
from jax.experimental.pallas import tpu as pltpu

# ---- module-consistent config ---------------------------------------------
LATENT_DIM = 32
CHANNELS = 4
IMG_SIZE = 16
HIDDEN = 512
IMG_FLAT = CHANNELS * IMG_SIZE * IMG_SIZE  # 1024
BN_EPS = 1e-5
LRELU_SLOPE = 0.2
TB_MAX = 512                  # batch tile for the tiled path (fills MXU M)
FUSED_MAX_ROWS = 512          # single-kernel fast-path threshold
VMEM_LIMIT = 32 * 1024 * 1024  # safe on v5e/v6e/v7x; lets TB=512 double-buffer


def _leaky_relu(x):
    # max(x, 0.2*x) == LeakyReLU(0.2) for slope in (0, 1): single vmax
    return jnp.maximum(x, LRELU_SLOPE * x)


def _round_up(x, m):
    return ((x + m - 1) // m) * m


# ---------------------------------------------------------------------------
# Fused fast path: whole (padded) batch in one tile, everything in one kernel.
# ---------------------------------------------------------------------------
def _fused_kernel(n_valid, n_rows, z_ref, w1_ref, b1_ref, w2_ref, b2_ref,
                  gamma_ref, beta_ref, w3_ref, b3_ref, out_ref):
    zt = z_ref[...].astype(jnp.bfloat16)
    h1 = jnp.dot(zt, w1_ref[...], preferred_element_type=jnp.float32) + b1_ref[...]
    h1 = _leaky_relu(h1)
    h2 = jnp.dot(h1.astype(jnp.bfloat16), w2_ref[...],
                 preferred_element_type=jnp.float32) + b2_ref[...]

    inv_n = 1.0 / float(n_valid)
    if n_rows != n_valid:
        # mask zero-padded rows out of the batch statistics
        row = jax.lax.broadcasted_iota(jnp.int32, (n_rows, 1), 0)
        mask = (row < n_valid).astype(jnp.float32)
        mean = jnp.sum(h2 * mask, axis=0, keepdims=True) * inv_n
        d = (h2 - mean) * mask
    else:
        mean = jnp.sum(h2, axis=0, keepdims=True) * inv_n
        d = h2 - mean
    var = jnp.sum(d * d, axis=0, keepdims=True) * inv_n  # centered (stable)

    scale = jax.lax.rsqrt(var + BN_EPS) * gamma_ref[...]
    h = (h2 - mean) * scale + beta_ref[...]
    h = _leaky_relu(h)

    h3 = jnp.dot(h.astype(jnp.bfloat16), w3_ref[...],
                 preferred_element_type=jnp.float32) + b3_ref[...]
    out_ref[...] = jnp.tanh(h3)


def _decoder_fused(z, params, n_valid, n_rows):
    w1, b1, w2, b2, gamma, beta, w3, b3 = params
    kernel = functools.partial(_fused_kernel, n_valid, n_rows)
    return pl.pallas_call(
        kernel,
        out_shape=jax.ShapeDtypeStruct((n_rows, IMG_FLAT), jnp.float32),
        grid=(1,),
        in_specs=[
            pl.BlockSpec((n_rows, LATENT_DIM), lambda i: (0, 0)),   # z
            pl.BlockSpec((LATENT_DIM, HIDDEN), lambda i: (0, 0)),   # w1
            pl.BlockSpec((1, HIDDEN), lambda i: (0, 0)),            # b1
            pl.BlockSpec((HIDDEN, HIDDEN), lambda i: (0, 0)),       # w2
            pl.BlockSpec((1, HIDDEN), lambda i: (0, 0)),            # b2
            pl.BlockSpec((1, HIDDEN), lambda i: (0, 0)),            # gamma
            pl.BlockSpec((1, HIDDEN), lambda i: (0, 0)),            # beta
            pl.BlockSpec((HIDDEN, IMG_FLAT), lambda i: (0, 0)),     # w3
            pl.BlockSpec((1, IMG_FLAT), lambda i: (0, 0)),          # b3
        ],
        out_specs=pl.BlockSpec((n_rows, IMG_FLAT), lambda i: (0, 0)),
        compiler_params=pltpu.CompilerParams(
            dimension_semantics=("arbitrary",),
            vmem_limit_bytes=VMEM_LIMIT),
    )(z, w1, b1, w2, b2, gamma, beta, w3, b3)


# ---------------------------------------------------------------------------
# Tiled path (large B): two pallas_calls, bf16 h2, per-tile BN partial stats
# so the batch axis stays "parallel" on both passes.
# ---------------------------------------------------------------------------
def _phase1_kernel(n_valid, n_pad, tb, z_ref, w1_ref, b1_ref, w2_ref, b2_ref,
                   h2_ref, stats_ref):
    i = pl.program_id(0)

    zt = z_ref[...].astype(jnp.bfloat16)
    h1 = jnp.dot(zt, w1_ref[...], preferred_element_type=jnp.float32) + b1_ref[...]
    h1 = _leaky_relu(h1)
    h2 = jnp.dot(h1.astype(jnp.bfloat16), w2_ref[...],
                 preferred_element_type=jnp.float32) + b2_ref[...]
    h2_ref[...] = h2.astype(jnp.bfloat16)   # bf16 intermediate: half the bytes

    def _stats(x):
        return jnp.concatenate(
            [jnp.sum(x, axis=0, keepdims=True),          # sum
             jnp.sum(x * x, axis=0, keepdims=True)],      # sum of squares
            axis=0)                                        # (2, HIDDEN)

    stats_ref[0] = _stats(h2)

    if n_pad != n_valid:
        last = n_pad // tb - 1
        # Only the last tile can contain zero-padded rows: mask there only.
        @pl.when(i == last)
        def _():
            row = last * tb + jax.lax.broadcasted_iota(jnp.int32, (tb, 1), 0)
            h2m = h2 * (row < n_valid).astype(jnp.float32)
            stats_ref[0] = _stats(h2m)


def _phase2_kernel(inv_n, h2_ref, stats_ref, gamma_ref, beta_ref, w3_ref,
                   b3_ref, out_ref):
    mean = stats_ref[0:1, :] * inv_n
    ex2 = stats_ref[1:2, :] * inv_n
    var = jnp.maximum(ex2 - mean * mean, 0.0)   # biased var (PyTorch norm path)
    scale = jax.lax.rsqrt(var + BN_EPS) * gamma_ref[...]

    h = (h2_ref[...].astype(jnp.float32) - mean) * scale + beta_ref[...]
    h = _leaky_relu(h)

    h3 = jnp.dot(h.astype(jnp.bfloat16), w3_ref[...],
                 preferred_element_type=jnp.float32) + b3_ref[...]
    out_ref[...] = jnp.tanh(h3)


def _decoder_tiled(z, params, n_valid, n_pad, tb):
    w1, b1, w2, b2, gamma, beta, w3, b3 = params
    num_tiles = n_pad // tb

    p1 = functools.partial(_phase1_kernel, n_valid, n_pad, tb)
    h2_full, stats_parts = pl.pallas_call(
        p1,
        out_shape=(jax.ShapeDtypeStruct((n_pad, HIDDEN), jnp.bfloat16),
                   jax.ShapeDtypeStruct((num_tiles, 2, HIDDEN), jnp.float32)),
        grid=(num_tiles,),
        in_specs=[
            pl.BlockSpec((tb, LATENT_DIM), lambda i: (i, 0)),       # z tile
            pl.BlockSpec((LATENT_DIM, HIDDEN), lambda i: (0, 0)),   # w1 (resident)
            pl.BlockSpec((1, HIDDEN), lambda i: (0, 0)),            # b1
            pl.BlockSpec((HIDDEN, HIDDEN), lambda i: (0, 0)),       # w2 (resident)
            pl.BlockSpec((1, HIDDEN), lambda i: (0, 0)),            # b2
        ],
        out_specs=(pl.BlockSpec((tb, HIDDEN), lambda i: (i, 0)),    # h2 tile (bf16)
                   pl.BlockSpec((1, 2, HIDDEN), lambda i: (i, 0, 0))),  # partial stats
        compiler_params=pltpu.CompilerParams(
            dimension_semantics=("parallel",),   # no cross-tile accumulator
            vmem_limit_bytes=VMEM_LIMIT),
    )(z, w1, b1, w2, b2)

    stats = jnp.sum(stats_parts, axis=0)   # (2, HIDDEN) global sums
    inv_n = 1.0 / float(n_valid)

    p2 = functools.partial(_phase2_kernel, inv_n)
    img_flat = pl.pallas_call(
        p2,
        out_shape=jax.ShapeDtypeStruct((n_pad, IMG_FLAT), jnp.float32),
        grid=(num_tiles,),
        in_specs=[
            pl.BlockSpec((tb, HIDDEN), lambda i: (i, 0)),           # h2 tile (bf16)
            pl.BlockSpec((2, HIDDEN), lambda i: (0, 0)),            # BN stats
            pl.BlockSpec((1, HIDDEN), lambda i: (0, 0)),            # gamma
            pl.BlockSpec((1, HIDDEN), lambda i: (0, 0)),            # beta
            pl.BlockSpec((HIDDEN, IMG_FLAT), lambda i: (0, 0)),     # w3 (resident)
            pl.BlockSpec((1, IMG_FLAT), lambda i: (0, 0)),          # b3
        ],
        out_specs=pl.BlockSpec((tb, IMG_FLAT), lambda i: (i, 0)),
        compiler_params=pltpu.CompilerParams(
            dimension_semantics=("parallel",),
            vmem_limit_bytes=VMEM_LIMIT),
    )(h2_full, stats, gamma, beta, w3, b3)
    return img_flat


# ---------------------------------------------------------------------------
# Public forward
# ---------------------------------------------------------------------------
def decoder_forward(z, params, *, tb_max=TB_MAX):
    """z: (B, LATENT_DIM) f32 -> img: (B, CHANNELS, IMG_SIZE, IMG_SIZE) f32."""
    B = z.shape[0]

    if B <= min(tb_max, FUSED_MAX_ROWS):
        # Fully fused single-kernel path; pad to full 8-row sublanes.
        B_pad = max(8, _round_up(B, 8))
        if B_pad != B:
            z = jnp.pad(z, ((0, B_pad - B), (0, 0)))
        img_flat = _decoder_fused(z, params, B, B_pad)
    else:
        TB = tb_max
        num_tiles = pl.cdiv(B, TB)
        B_pad = num_tiles * TB
        if B_pad != B:
            z = jnp.pad(z, ((0, B_pad - B), (0, 0)))
        img_flat = _decoder_tiled(z, params, B, B_pad, TB)

    # Drop padded rows and reshape to NCHW like PyTorch's .view(B, C, H, W)
    return img_flat[:B].reshape(B, CHANNELS, IMG_SIZE, IMG_SIZE)


def decoder_reference(z, params):
    """Pure-JAX reference with the same bf16-operand / f32-accumulate matmuls."""
    w1, b1, w2, b2, gamma, beta, w3, b3 = params
    h1 = jnp.dot(z.astype(jnp.bfloat16), w1,
                 preferred_element_type=jnp.float32) + b1
    h1 = _leaky_relu(h1)
    h2 = jnp.dot(h1.astype(jnp.bfloat16), w2,
                 preferred_element_type=jnp.float32) + b2
    mean = jnp.mean(h2, axis=0, keepdims=True)
    var = jnp.mean((h2 - mean) ** 2, axis=0, keepdims=True)
    h = (h2 - mean) * jax.lax.rsqrt(var + BN_EPS) * gamma + beta
    h = _leaky_relu(h)
    h3 = jnp.dot(h.astype(jnp.bfloat16), w3,
                 preferred_element_type=jnp.float32) + b3
    out = jnp.tanh(h3)
    B = z.shape[0]
    return out.reshape(B, CHANNELS, IMG_SIZE, IMG_SIZE)


def init_params(key):
    """Deterministic init mirroring nn.Linear defaults (uniform +/- 1/sqrt(fan_in)).
    Weights stored (in, out) in bfloat16 so the kernel computes x @ W on the MXU;
    biases / BN affine stay f32."""
    k1, k2, k3, k4, k5, k6 = jax.random.split(key, 6)

    def lin(kw, kb, fan_in, fan_out):
        bound = 1.0 / jnp.sqrt(fan_in)
        w = jax.random.uniform(kw, (fan_in, fan_out), jnp.float32, -bound, bound)
        b = jax.random.uniform(kb, (1, fan_out), jnp.float32, -bound, bound)
        return w.astype(jnp.bfloat16), b

    w1, b1 = lin(k1, k2, LATENT_DIM, HIDDEN)
    w2, b2 = lin(k3, k4, HIDDEN, HIDDEN)
    w3, b3 = lin(k5, k6, HIDDEN, IMG_FLAT)
    gamma = jnp.ones((1, HIDDEN), jnp.float32)   # BatchNorm1d default affine init
    beta = jnp.zeros((1, HIDDEN), jnp.float32)
    return (w1, b1, w2, b2, gamma, beta, w3, b3)


if __name__ == "__main__":
    key = jax.random.PRNGKey(0)
    kz, kp, kz2 = jax.random.split(key, 3)
    params = init_params(kp)

    # --- small batch: fused single-kernel fast path ---
    B = 2
    z = jax.random.normal(kz, (B, LATENT_DIM), jnp.float32)
    img = decoder_forward(z, params)
    jax.block_until_ready(img)
    ref = decoder_reference(z, params)
    assert img.shape == (B, CHANNELS, IMG_SIZE, IMG_SIZE), img.shape
    assert img.dtype == jnp.float32
    assert bool(jnp.all(jnp.isfinite(img)))
    assert bool(jnp.all(jnp.abs(img) <= 1.0))           # tanh output range
    assert bool(jnp.max(jnp.abs(img - ref)) < 2e-2)      # matches JAX reference

    # --- tiled path, exercised at a small tile size (3 tiles, padded last tile) ---
    B2 = 44
    z2 = jax.random.normal(kz2, (B2, LATENT_DIM), jnp.float32)
    img2 = decoder_forward(z2, params, tb_max=16)
    jax.block_until_ready(img2)
    ref2 = decoder_reference(z2, params)
    assert img2.shape == (B2, CHANNELS, IMG_SIZE, IMG_SIZE)
    assert bool(jnp.all(jnp.isfinite(img2)))
    assert bool(jnp.max(jnp.abs(img2 - ref2)) < 2e-2)

    print("KERNEL_OK")
</pallas_src>

<mosaic_0001>
module attributes {stable_mosaic.version = 11 : i64} {
  func.func @_fused_kernel(%arg0: i32, %arg1: memref<8x32xf32, #tpu.memory_space<vmem>>, %arg2: memref<32x512xbf16, #tpu.memory_space<vmem>>, %arg3: memref<1x512xf32, #tpu.memory_space<vmem>>, %arg4: memref<512x512xbf16, #tpu.memory_space<vmem>>, %arg5: memref<1x512xf32, #tpu.memory_space<vmem>>, %arg6: memref<1x512xf32, #tpu.memory_space<vmem>>, %arg7: memref<1x512xf32, #tpu.memory_space<vmem>>, %arg8: memref<512x1024xbf16, #tpu.memory_space<vmem>>, %arg9: memref<1x1024xf32, #tpu.memory_space<vmem>>, %arg10: memref<8x1024xf32, #tpu.memory_space<vmem>>) attributes {dimension_semantics = [#tpu.dimension_semantics<arbitrary>], iteration_bounds = array<i64: 1>, scalar_prefetch = 0 : i64, scratch_operands = 0 : i64, tpu.core_type = #tpu.core_type<tc>, window_params = [{pipeline_mode = #tpu.pipeline_mode<synchronous>, transform_indices = @transform_0, window_bounds = array<i64: 8, 32>}, {pipeline_mode = #tpu.pipeline_mode<synchronous>, transform_indices = @transform_1, window_bounds = array<i64: 32, 512>}, {pipeline_mode = #tpu.pipeline_mode<synchronous>, transform_indices = @transform_2, window_bounds = array<i64: 1, 512>}, {pipeline_mode = #tpu.pipeline_mode<synchronous>, transform_indices = @transform_3, window_bounds = array<i64: 512, 512>}, {pipeline_mode = #tpu.pipeline_mode<synchronous>, transform_indices = @transform_4, window_bounds = array<i64: 1, 512>}, {pipeline_mode = #tpu.pipeline_mode<synchronous>, transform_indices = @transform_5, window_bounds = array<i64: 1, 512>}, {pipeline_mode = #tpu.pipeline_mode<synchronous>, transform_indices = @transform_6, window_bounds = array<i64: 1, 512>}, {pipeline_mode = #tpu.pipeline_mode<synchronous>, transform_indices = @transform_7, window_bounds = array<i64: 512, 1024>}, {pipeline_mode = #tpu.pipeline_mode<synchronous>, transform_indices = @transform_8, window_bounds = array<i64: 1, 1024>}, {pipeline_mode = #tpu.pipeline_mode<synchronous>, transform_indices = @transform_9, window_bounds = array<i64: 8, 1024>}]} {
    %c0 = arith.constant 0 : index
    %c0_0 = arith.constant 0 : index
    %0 = vector.load %arg1[%c0, %c0_0] : memref<8x32xf32, #tpu.memory_space<vmem>>, vector<8x32xf32>
    %1 = arith.truncf %0 : vector<8x32xf32> to vector<8x32xbf16>
    %c0_1 = arith.constant 0 : index
    %c0_2 = arith.constant 0 : index
    %2 = vector.load %arg2[%c0_1, %c0_2] : memref<32x512xbf16, #tpu.memory_space<vmem>>, vector<32x512xbf16>
    %cst = arith.constant dense<0.000000e+00> : vector<8x512xf32>
    %3 = tpu.matmul %1, %2, %cst {dimension_numbers = #tpu.dot_dimension_numbers<[1], [0], [0], [1], [0, 0, 1, 1], [], []>} : vector<8x32xbf16>, vector<32x512xbf16>, vector<8x512xf32> -> vector<8x512xf32>
    %c0_3 = arith.constant 0 : index
    %c0_4 = arith.constant 0 : index
    %4 = vector.load %arg3[%c0_3, %c0_4] : memref<1x512xf32, #tpu.memory_space<vmem>>, vector<1x512xf32>
    %5 = vector.broadcast %4 : vector<1x512xf32> to vector<8x512xf32>
    %6 = arith.addf %3, %5 : vector<8x512xf32>
    %cst_5 = arith.constant 2.000000e-01 : f32
    %7 = vector.broadcast %cst_5 : f32 to vector<8x512xf32>
    %8 = arith.mulf %7, %6 : vector<8x512xf32>
    %9 = arith.maximumf %6, %8 : vector<8x512xf32>
    %10 = arith.truncf %9 : vector<8x512xf32> to vector<8x512xbf16>
    %c0_6 = arith.constant 0 : index
    %c0_7 = arith.constant 0 : index
    %11 = vector.load %arg4[%c0_6, %c0_7] : memref<512x512xbf16, #tpu.memory_space<vmem>>, vector<512x512xbf16>
    %cst_8 = arith.constant dense<0.000000e+00> : vector<8x512xf32>
    %12 = tpu.matmul %10, %11, %cst_8 {dimension_numbers = #tpu.dot_dimension_numbers<[1], [0], [0], [1], [0, 0, 1, 1], [], []>} : vector<8x512xbf16>, vector<512x512xbf16>, vector<8x512xf32> -> vector<8x512xf32>
    %c0_9 = arith.constant 0 : index
    %c0_10 = arith.constant 0 : index
    %13 = vector.load %arg5[%c0_9, %c0_10] : memref<1x512xf32, #tpu.memory_space<vmem>>, vector<1x512xf32>
    %14 = vector.broadcast %13 : vector<1x512xf32> to vector<8x512xf32>
    %15 = arith.addf %12, %14 : vector<8x512xf32>
    %16 = tpu.iota {dimensions = array<i32: 0>} : vector<8x1xi32>
    %c2_i32 = arith.constant 2 : i32
    %17 = vector.broadcast %c2_i32 : i32 to vector<8x1xi32>
    %18 = arith.cmpi slt, %16, %17 : vector<8x1xi32>
    %19 = arith.extui %18 : vector<8x1xi1> to vector<8x1xi32>
    %20 = arith.sitofp %19 : vector<8x1xi32> to vector<8x1xf32>
    %21 = vector.broadcast %20 : vector<8x1xf32> to vector<8x512xf32>
    %22 = arith.mulf %15, %21 : vector<8x512xf32>
    %cst_11 = arith.constant dense<0.000000e+00> : vector<512xf32>
    %23 = vector.multi_reduction <add>, %22, %cst_11 [0] : vector<8x512xf32> to vector<512xf32>
    %24 = vector.shape_cast %23 : vector<512xf32> to vector<1x512xf32>
    %cst_12 = arith.constant 5.000000e-01 : f32
    %25 = vector.broadcast %cst_12 : f32 to vector<1x512xf32>
    %26 = arith.mulf %24, %25 : vector<1x512xf32>
    %27 = vector.broadcast %26 : vector<1x512xf32> to vector<8x512xf32>
    %28 = arith.subf %15, %27 : vector<8x512xf32>
    %29 = vector.broadcast %20 : vector<8x1xf32> to vector<8x512xf32>
    %30 = arith.mulf %28, %29 : vector<8x512xf32>
    %31 = arith.mulf %30, %30 : vector<8x512xf32>
    %cst_13 = arith.constant dense<0.000000e+00> : vector<512xf32>
    %32 = vector.multi_reduction <add>, %31, %cst_13 [0] : vector<8x512xf32> to vector<512xf32>
    %33 = vector.shape_cast %32 : vector<512xf32> to vector<1x512xf32>
    %cst_14 = arith.constant 5.000000e-01 : f32
    %34 = vector.broadcast %cst_14 : f32 to vector<1x512xf32>
    %35 = arith.mulf %33, %34 : vector<1x512xf32>
    %cst_15 = arith.constant 9.99999974E-6 : f32
    %36 = vector.broadcast %cst_15 : f32 to vector<1x512xf32>
    %37 = arith.addf %35, %36 : vector<1x512xf32>
    %38 = math.rsqrt %37 : vector<1x512xf32>
    %c0_16 = arith.constant 0 : index
    %c0_17 = arith.constant 0 : index
    %39 = vector.load %arg6[%c0_16, %c0_17] : memref<1x512xf32, #tpu.memory_space<vmem>>, vector<1x512xf32>
    %40 = arith.mulf %38, %39 : vector<1x512xf32>
    %41 = vector.broadcast %26 : vector<1x512xf32> to vector<8x512xf32>
    %42 = arith.subf %15, %41 : vector<8x512xf32>
    %43 = vector.broadcast %40 : vector<1x512xf32> to vector<8x512xf32>
    %44 = arith.mulf %42, %43 : vector<8x512xf32>
    %c0_18 = arith.constant 0 : index
    %c0_19 = arith.constant 0 : index
    %45 = vector.load %arg7[%c0_18, %c0_19] : memref<1x512xf32, #tpu.memory_space<vmem>>, vector<1x512xf32>
    %46 = vector.broadcast %45 : vector<1x512xf32> to vector<8x512xf32>
    %47 = arith.addf %44, %46 : vector<8x512xf32>
    %cst_20 = arith.constant 2.000000e-01 : f32
    %48 = vector.broadcast %cst_20 : f32 to vector<8x512xf32>
    %49 = arith.mulf %48, %47 : vector<8x512xf32>
    %50 = arith.maximumf %47, %49 : vector<8x512xf32>
    %51 = arith.truncf %50 : vector<8x512xf32> to vector<8x512xbf16>
    %c0_21 = arith.constant 0 : index
    %c0_22 = arith.constant 0 : index
    %52 = vector.load %arg8[%c0_21, %c0_22] : memref<512x1024xbf16, #tpu.memory_space<vmem>>, vector<512x1024xbf16>
    %cst_23 = arith.constant dense<0.000000e+00> : vector<8x1024xf32>
    %53 = tpu.matmul %51, %52, %cst_23 {dimension_numbers = #tpu.dot_dimension_numbers<[1], [0], [0], [1], [0, 0, 1, 1], [], []>} : vector<8x512xbf16>, vector<512x1024xbf16>, vector<8x1024xf32> -> vector<8x1024xf32>
    %c0_24 = arith.constant 0 : index
    %c0_25 = arith.constant 0 : index
    %54 = vector.load %arg9[%c0_24, %c0_25] : memref<1x1024xf32, #tpu.memory_space<vmem>>, vector<1x1024xf32>
    %55 = vector.broadcast %54 : vector<1x1024xf32> to vector<8x1024xf32>
    %56 = arith.addf %53, %55 : vector<8x1024xf32>
    %57 = math.tanh %56 : vector<8x1024xf32>
    %c0_26 = arith.constant 0 : index
    %c0_27 = arith.constant 0 : index
    %58 = vector.load %arg10[%c0_26, %c0_27] : memref<8x1024xf32, #tpu.memory_space<vmem>>, vector<8x1024xf32>
    tpu.vector_store %arg10[%c0_26, %c0_27], %57 {strides = array<i32>} : memref<8x1024xf32, #tpu.memory_space<vmem>>, vector<8x1024xf32>,
    return
  }
  func.func @transform_0(%arg0: i32) -> (i32, i32) {
    %c0_i32 = arith.constant 0 : i32
    %c0_i32_0 = arith.constant 0 : i32
    %c0_i32_1 = arith.constant 0 : i32
    return %c0_i32, %c0_i32_0 : i32, i32
  }
  func.func @transform_1(%arg0: i32) -> (i32, i32) {
    %c0_i32 = arith.constant 0 : i32
    %c0_i32_0 = arith.constant 0 : i32
    %c0_i32_1 = arith.constant 0 : i32
    return %c0_i32, %c0_i32_0 : i32, i32
  }
  func.func @transform_2(%arg0: i32) -> (i32, i32) {
    %c0_i32 = arith.constant 0 : i32
    %c0_i32_0 = arith.constant 0 : i32
    %c0_i32_1 = arith.constant 0 : i32
    return %c0_i32, %c0_i32_0 : i32, i32
  }
  func.func @transform_3(%arg0: i32) -> (i32, i32) {
    %c0_i32 = arith.constant 0 : i32
    %c0_i32_0 = arith.constant 0 : i32
    %c0_i32_1 = arith.constant 0 : i32
    return %c0_i32, %c0_i32_0 : i32, i32
  }
  func.func @transform_4(%arg0: i32) -> (i32, i32) {
    %c0_i32 = arith.constant 0 : i32
    %c0_i32_0 = arith.constant 0 : i32
    %c0_i32_1 = arith.constant 0 : i32
    return %c0_i32, %c0_i32_0 : i32, i32
  }
  func.func @transform_5(%arg0: i32) -> (i32, i32) {
    %c0_i32 = arith.constant 0 : i32
    %c0_i32_0 = arith.constant 0 : i32
    %c0_i32_1 = arith.constant 0 : i32
    return %c0_i32, %c0_i32_0 : i32, i32
  }
  func.func @transform_6(%arg0: i32) -> (i32, i32) {
    %c0_i32 = arith.constant 0 : i32
    %c0_i32_0 = arith.constant 0 : i32
    %c0_i32_1 = arith.constant 0 : i32
    return %c0_i32, %c0_i32_0 : i32, i32
  }
  func.func @transform_7(%arg0: i32) -> (i32, i32) {
    %c0_i32 = arith.constant 0 : i32
    %c0_i32_0 = arith.constant 0 : i32
    %c0_i32_1 = arith.constant 0 : i32
    return %c0_i32, %c0_i32_0 : i32, i32
  }
  func.func @transform_8(%arg0: i32) -> (i32, i32) {
    %c0_i32 = arith.constant 0 : i32
    %c0_i32_0 = arith.constant 0 : i32
    %c0_i32_1 = arith.constant 0 : i32
    return %c0_i32, %c0_i32_0 : i32, i32
  }
  func.func @transform_9(%arg0: i32) -> (i32, i32) {
    %c0_i32 = arith.constant 0 : i32
    %c0_i32_0 = arith.constant 0 : i32
    %c0_i32_1 = arith.constant 0 : i32
    return %c0_i32, %c0_i32_0 : i32, i32
  }
}

</mosaic_0001>

<bundles_post_ra>
// kernel: tpu_custom_call.1
= control target key start
LH: loop header
LB: loop body
LE: loop exit
PB: predicated region body
PF: predicated region fallthrough
CT: control target
= control target key end

     0   :  { %14 = vsyncpa [#allocation3], 0  ;;  %s4411_s0 = inlined_call_operand.hbm [shape: f32[8,32], index: 0, kind: input, shape index: {}]   ;;  %s4412_s1 = inlined_call_operand.hbm [shape: bf16[32,512], index: 1, kind: input, shape index: {}]   ;;  %s4413_s2 = inlined_call_operand.vmem [shape: f32[1,512], index: 2, kind: input, shape index: {}]   ;;  %s4414_s3 = inlined_call_operand.hbm [shape: bf16[512,512], index: 3, kind: input, shape index: {}]   ;;  %s4415_s4 = inlined_call_operand.hbm [shape: f32[1,512], index: 4, kind: input, shape index: {}]   ;;  %s4416_s5 = inlined_call_operand.vmem [shape: f32[1,512], index: 5, kind: input, shape index: {}]   ;;  %s4417_s6 = inlined_call_operand.vmem [shape: f32[1,512], index: 6, kind: input, shape index: {}]   ;;  %s4418_s7 = inlined_call_operand.hbm [shape: bf16[512,1024], index: 7, kind: input, shape index: {}]   ;;  %s4419_s8 = inlined_call_operand.vmem [shape: f32[1,1024], index: 8, kind: input, shape index: {}]   ;;  %s4420_s9 = inlined_call_operand.hbm [shape: f32[8,1024], index: 9, kind: output, shape index: {}]  }
   0x1   :  { %15 = vsyncpa [#allocation6], 0 }
   0x2   :  { %16 = vsyncpa [#allocation9], 0 }
   0x3   :  { %17 = vsyncpa [#allocation4], 0  ;;  %s4141_s30 = smov [#allocation5]   ;;  %s4001_s13 = scalar_lea.hbm %s4412_s1, 1024 }
   0x4   :  { %s33_s10 = sshll.u32 %s4141_s30, 4  ;;  %p4002_p0 = scmp.ne.s32.totalorder %s4412_s1, %s4001_s13  ;;  %s34_s10 = int_to_ptr.vmem [resolvable:$true] %s33_s10 }
   0x5   :  { %p4005_p1 = scmp.lt.u32.totalorder %s4001_s13, %s4412_s1 }
   0x7   :  { %p4007_p2 = pnand %p4005_p1, %p4002_p0 }
   0x9   :  { %4010 = shalt.err (!%p4007_p2)
}
   0xa   :  { %s4011_s18 = scalar_lea.vmem %s34_s10, 1024  ;;  %p4016_p4 = scmp.lt.s32.totalorder %s34_s10, %s34_s10 }
   0xb   :  { %p4012_p3 = scmp.ne.s32.totalorder %s34_s10, %s4011_s18  ;;  %p4017_p5 = scmp.lt.s32.totalorder %s4011_s18, %s4011_s18 }
   0xd   :  { %p4018_p6 = por %p4017_p5, %p4016_p4 }
   0xf   :  { %p4019_p7 = pnand %p4018_p6, %p4012_p3 }
  0x11   :  { %4022 = shalt.err (!%p4019_p7)
}
  0x12   :  { %s4142_s19 = smov 256   ;;  %s4143_s20 = smov 16  }
  0x13   :  { %39 = dma.hbm_to_vmem [thread:$0]  %s4412_s1, 1024, %s34_s10, [#allocation6], %s4142_s19, %s4142_s19, %s4143_s20  }
  0x14   :  { %s4144_s23 = smov [#allocation8]   ;;  %s4145_s25 = smov [#allocation2]  }
  0x15   :  { %s60_s24 = sshll.u32 %s4144_s23, 4  ;;  %s24_s26 = sshll.u32 %s4145_s25, 4  ;;  %s61_s24 = int_to_ptr.vmem [resolvable:$true] %s60_s24  ;;  %s25_s26 = int_to_ptr.vmem [resolvable:$true] %s24_s26 }
  0x16   :  { %s4023_s29 = scalar_lea.hbm %s4415_s4, 64 }
  0x17   :  { %p4024_p8 = scmp.ne.s32.totalorder %s4415_s4, %s4023_s29  ;;  %p4027_p9 = scmp.lt.u32.totalorder %s4023_s29, %s4415_s4 }
  0x19   :  { %p4029_p10 = pnand %p4027_p9, %p4024_p8 }
  0x1b   :  { %4032 = shalt.err (!%p4029_p10)
}
  0x1c   :  { %s4033_s1 = scalar_lea.vmem %s61_s24, 64  ;;  %p4038_p12 = scmp.lt.s32.totalorder %s61_s24, %s61_s24 }
  0x1d   :  { %p4034_p11 = scmp.ne.s32.totalorder %s61_s24, %s4033_s1  ;;  %p4039_p13 = scmp.lt.s32.totalorder %s4033_s1, %s4033_s1 }
  0x1f   :  { %p4040_p0 = por %p4039_p13, %p4038_p12 }
  0x21   :  { %p4041_p1 = pnand %p4040_p0, %p4034_p11 }
  0x23   :  { %4044 = shalt.err (!%p4041_p1)
}
  0x24   :  { %63 = dma.hbm_to_vmem [thread:$0]  %s4415_s4, 64, %s61_s24, [#allocation9]  }
  0x25   :  { %s4045_s17 = scalar_lea.hbm %s4411_s0, 128 }
  0x26   :  { %p4046_p2 = scmp.ne.s32.totalorder %s4411_s0, %s4045_s17  ;;  %p4049_p3 = scmp.lt.u32.totalorder %s4045_s17, %s4411_s0 }
  0x28   :  { %p4051_p4 = pnand %p4049_p3, %p4046_p2 }
  0x2a   :  { %4054 = shalt.err (!%p4051_p4)
}
  0x2b   :  { %s4055_s25 = scalar_lea.vmem %s25_s26, 128  ;;  %p4060_p6 = scmp.lt.s32.totalorder %s25_s26, %s25_s26 }
  0x2c   :  { %p4056_p5 = scmp.ne.s32.totalorder %s25_s26, %s4055_s25  ;;  %p4061_p7 = scmp.lt.s32.totalorder %s4055_s25, %s4055_s25 }
  0x2e   :  { %p4062_p8 = por %p4061_p7, %p4060_p6 }
  0x30   :  { %p4063_p9 = pnand %p4062_p8, %p4056_p5 }
  0x32   :  { %4066 = shalt.err (!%p4063_p9)
}
  0x33   :  { %27 = dma.hbm_to_vmem [thread:$0]  %s4411_s0, 128, %s25_s26, [#allocation3]  }
  0x34   :  { %s4146_s27 = smov [#allocation7]   ;;  %s4147_s29 = smov [#allocation10]  }
  0x35   :  { %s47_s28 = sshll.u32 %s4146_s27, 4  ;;  %s73_s30 = sshll.u32 %s4147_s29, 4  ;;  %s48_s28 = int_to_ptr.vmem [resolvable:$true] %s47_s28  ;;  %s74_s30 = int_to_ptr.vmem [resolvable:$true] %s73_s30 }
  0x36   :  { %s4067_s13 = scalar_lea.hbm %s4414_s3, 16384 }
  0x37   :  { %p4068_p10 = scmp.ne.s32.totalorder %s4414_s3, %s4067_s13  ;;  %p4071_p11 = scmp.lt.u32.totalorder %s4067_s13, %s4414_s3 }
  0x39   :  { %p4073_p12 = pnand %p4071_p11, %p4068_p10 }
  0x3b   :  { %4076 = shalt.err (!%p4073_p12)
}
  0x3c   :  { %s4077_s0 = scalar_lea.vmem %s48_s28, 16384  ;;  %p4082_p0 = scmp.lt.s32.totalorder %s48_s28, %s48_s28 }
  0x3d   :  { %p4078_p13 = scmp.ne.s32.totalorder %s48_s28, %s4077_s0  ;;  %p4083_p1 = scmp.lt.s32.totalorder %s4077_s0, %s4077_s0 }
  0x3f   :  { %p4084_p2 = por %p4083_p1, %p4082_p0 }
  0x41   :  { %p4085_p3 = pnand %p4084_p2, %p4078_p13 }
  0x43   :  { %4088 = shalt.err (!%p4085_p3)
}
  0x44   :  { %53 = dma.hbm_to_vmem [thread:$0]  %s4414_s3, 16384, %s48_s28, [#allocation6], %s4142_s19, %s4142_s19, %s4143_s20  }
  0x45   :  { %s4089_s21 = scalar_lea.hbm %s4418_s7, 32768 }
  0x46   :  { %p4090_p4 = scmp.ne.s32.totalorder %s4418_s7, %s4089_s21  ;;  %p4093_p5 = scmp.lt.u32.totalorder %s4089_s21, %s4418_s7 }
  0x48   :  { %p4095_p6 = pnand %p4093_p5, %p4090_p4 }
  0x4a   :  { %4098 = shalt.err (!%p4095_p6)
}
  0x4b   :  { %s4099_s24 = scalar_lea.vmem %s74_s30, 32768  ;;  %p4104_p8 = scmp.lt.s32.totalorder %s74_s30, %s74_s30 }
  0x4c   :  { %p4100_p7 = scmp.ne.s32.totalorder %s74_s30, %s4099_s24  ;;  %p4105_p9 = scmp.lt.s32.totalorder %s4099_s24, %s4099_s24 }
  0x4e   :  { %p4106_p10 = por %p4105_p9, %p4104_p8 }
  0x50   :  { %p4107_p11 = pnand %p4106_p10, %p4100_p7 }
  0x52   :  { %4110 = shalt.err (!%p4107_p11)
}
  0x53   :  { %s4148_s3 = smov 512   ;;  %s4149_s19 = smov 32  }
  0x54   :  { %79 = dma.hbm_to_vmem [thread:$0]  %s4418_s7, 32768, %s74_s30, [#allocation9], %s4148_s3, %s4148_s3, %s4149_s19  }
  0x55   :  { %4133 = dma.done.wait [#allocation3], 128  }
  0x56   :  { %4134 = vsyncadd [#allocation3], 4294967168 }
  0x57   :  { %4135 = dma.done.wait [#allocation6], 17408  }
  0x58   :  { %4136 = vsyncadd [#allocation6], 4294949888 }
  0x59   :  { %4137 = dma.done.wait [#allocation9], 32832  }
  0x5a   :  { %4138 = vsyncadd [#allocation9], 4294934464  ;;  %v4150_v0 = vmov 0   ;;  %v3773_v1 = vld [vmem:[#allocation5 + $0x4] ss:$16 sps:$4 sm:$0xff]   ;;  %v98_v5 = vld [vmem:[#allocation2] sm:$0xff] }
  0x5b   :  { %206 = vmatprep.mubr.bf16.mxu0 %v4150_v0  ;;  %247 = vmatprep.mubr.bf16.mxu1 %v4150_v0  ;;  %v3775_v2 = vld [vmem:[#allocation5] ss:$16 sps:$4 sm:$0xff]   ;;  %v3776_v3 = vld [vmem:[#allocation5 + $0x24] ss:$16 sps:$4 sm:$0xff]   ;;  %v3779_v6 = vld [vmem:[#allocation5 + $0xc] ss:$16 sps:$4 sm:$0xff]   ;;  %v99_v9 = vpack.c.bf16 %v98_v5, %v98_v5 }
  0x5c   :  { %174 = vmatprep.subr.bf16.mxu0 %v3773_v1  ;;  %v3778_v4 = vld [vmem:[#allocation5 + $0x20] ss:$16 sps:$4 sm:$0xff]   ;;  %v3781_v7 = vld [vmem:[#allocation5 + $0x8] ss:$16 sps:$4 sm:$0xff]   ;;  %215 = vmatprep.subr.bf16.mxu1 %v3779_v6  ;;  %v3782_v8 = vld [vmem:[#allocation5 + $0x2c] ss:$16 sps:$4 sm:$0xff]  }
  0x5d   :  { %175 = vmatpush1.bf16.msra.mxu0 %v3775_v2  ;;  %216 = vmatpush1.bf16.msra.mxu1 %v3781_v7  ;;  %v3784_v10 = vld [vmem:[#allocation5 + $0x28] ss:$16 sps:$4 sm:$0xff]   ;;  %v3787_v11 = vld [vmem:[#allocation7 + $0x4] ss:$16 sps:$4 sm:$0xff]   ;;  %vm170_vm0 = vcmask 261120  }
  0x5e   :  { %176 = vmatprep.subr.bf16.mxu0 %v3776_v3  ;;  %217 = vmatprep.subr.bf16.mxu1 %v3782_v8  ;;  %v3785_v12 = vld [vmem:[#allocation7] ss:$16 sps:$4 sm:$0xff]   ;;  %v3790_v13 = vld [vmem:[#allocation7 + $0xc] ss:$16 sps:$4 sm:$0xff]   ;;  %v3793_v14 = vld [vmem:[#allocation7 + $0x24] ss:$16 sps:$4 sm:$0xff]  }
  0x5f   :  { %v3788_v15 = vld [vmem:[#allocation7 + $0x8] ss:$16 sps:$4 sm:$0xff]   ;;  %v3791_v16 = vld [vmem:[#allocation7 + $0x20] ss:$16 sps:$4 sm:$0xff]   ;;  %v3796_v17 = vld [vmem:[#allocation7 + $0x2c] ss:$16 sps:$4 sm:$0xff]  }
  0x60   :  { %v3799_v18 = vld [vmem:[#allocation7 + $0x44] ss:$16 sps:$4 sm:$0xff]   ;;  %v3794_v19 = vld [vmem:[#allocation7 + $0x28] ss:$16 sps:$4 sm:$0xff]   ;;  %v3797_v20 = vld [vmem:[#allocation7 + $0x40] ss:$16 sps:$4 sm:$0xff]  }
  0x61   :  { %177 = vmatpush1.bf16.msra.mxu0 %v3778_v4  ;;  %218 = vmatpush1.bf16.msra.mxu1 %v3784_v10  ;;  %v3802_v21 = vld [vmem:[#allocation7 + $0x4c] ss:$16 sps:$4 sm:$0xff]   ;;  %v3805_v22 = vld [vmem:[#allocation7 + $0x64] ss:$16 sps:$4 sm:$0xff]   ;;  %v3800_v23 = vld [vmem:[#allocation7 + $0x48] ss:$16 sps:$4 sm:$0xff]  }
  0x62   :  { %1058 = vmatprep.subr.bf16.mxu0 %v3787_v11  ;;  %1140 = vmatprep.subr.bf16.mxu1 %v3790_v13  ;;  %v3803_v24 = vld [vmem:[#allocation7 + $0x60] ss:$16 sps:$4 sm:$0xff]   ;;  %v3808_v25 = vld [vmem:[#allocation7 + $0x6c] ss:$16 sps:$4 sm:$0xff]   ;;  %v3811_v26 = vld [vmem:[#allocation7 + $0x84] ss:$16 sps:$4 sm:$0xff]   ;;  %v110_v13 = vlaneseq }
  0x63   :  { %v3806_v27 = vld [vmem:[#allocation7 + $0x68] ss:$16 sps:$4 sm:$0xff]   ;;  %v3809_v28 = vld [vmem:[#allocation7 + $0x80] ss:$16 sps:$4 sm:$0xff]   ;;  %v3814_v29 = vld [vmem:[#allocation7 + $0x8c] ss:$16 sps:$4 sm:$0xff]  }
  0x64   :  { %3338 = vmatmul.mubr.msk.bf16.vlgmr.msra.gmra.mrb[0].mxu0 %vm170_vm0, %v99_v9  ;;  %3339 = vmatmul.mubr.msk.bf16.vlgmr.msra.gmra.mrb[0].mxu1 %vm170_vm0, %v99_v9  ;;  %v3817_v30 = vld [vmem:[#allocation7 + $0xa4] ss:$16 sps:$4 sm:$0xff]   ;;  %v3812_v31 = vld [vmem:[#allocation7 + $0x88] ss:$16 sps:$4 sm:$0xff]   ;;  %v3815_v32 = vld [vmem:[#allocation7 + $0xa0] ss:$16 sps:$4 sm:$0xff]  }
  0x65   :  { %1059 = vmatpush1.bf16.msra.mxu0 %v3785_v12  ;;  %1141 = vmatpush1.bf16.msra.mxu1 %v3788_v15  ;;  %v3820_v33 = vld [vmem:[#allocation7 + $0xac] ss:$16 sps:$4 sm:$0xff]   ;;  %v3823_v34 = vld [vmem:[#allocation7 + $0xc4] ss:$16 sps:$4 sm:$0xff]   ;;  %v3818_v35 = vld [vmem:[#allocation7 + $0xa8] ss:$16 sps:$4 sm:$0xff]  }
  0x66   :  { %1060 = vmatprep.subr.bf16.mxu0 %v3793_v14  ;;  %1142 = vmatprep.subr.bf16.mxu1 %v3796_v17  ;;  %v3821_v36 = vld [vmem:[#allocation7 + $0xc0] ss:$16 sps:$4 sm:$0xff]   ;;  %v3826_v37 = vld [vmem:[#allocation7 + $0xcc] ss:$16 sps:$4 sm:$0xff]   ;;  %v3829_v38 = vld [vmem:[#allocation7 + $0xe4] ss:$16 sps:$4 sm:$0xff]  }
  0x67   :  { %v3824_v39 = vld [vmem:[#allocation7 + $0xc8] ss:$16 sps:$4 sm:$0xff]   ;;  %v3827_v40 = vld [vmem:[#allocation7 + $0xe0] ss:$16 sps:$4 sm:$0xff]   ;;  %v3832_v41 = vld [vmem:[#allocation7 + $0xec] ss:$16 sps:$4 sm:$0xff]  }
  0x68   :  { %v3835_v42 = vld [vmem:[#allocation7 + $0x104] ss:$16 sps:$4 sm:$0xff]   ;;  %v3830_v43 = vld [vmem:[#allocation7 + $0xe8] ss:$16 sps:$4 sm:$0xff]   ;;  %v3833_v44 = vld [vmem:[#allocation7 + $0x100] ss:$16 sps:$4 sm:$0xff]  }
  0x69   :  { %1061 = vmatpush1.bf16.msra.mxu0 %v3791_v16  ;;  %1143 = vmatpush1.bf16.msra.mxu1 %v3794_v19  ;;  %v3838_v45 = vld [vmem:[#allocation7 + $0x10c] ss:$16 sps:$4 sm:$0xff]   ;;  %v3841_v46 = vld [vmem:[#allocation7 + $0x124] ss:$16 sps:$4 sm:$0xff]   ;;  %v3836_v47 = vld [vmem:[#allocation7 + $0x108] ss:$16 sps:$4 sm:$0xff]  }
  0x6a   :  { %1062 = vmatprep.subr.bf16.mxu0 %v3799_v18  ;;  %1144 = vmatprep.subr.bf16.mxu1 %v3802_v21  ;;  %v3839_v48 = vld [vmem:[#allocation7 + $0x120] ss:$16 sps:$4 sm:$0xff]   ;;  %v3844_v49 = vld [vmem:[#allocation7 + $0x12c] ss:$16 sps:$4 sm:$0xff]   ;;  %v3847_v50 = vld [vmem:[#allocation7 + $0x144] ss:$16 sps:$4 sm:$0xff]  }
  0x6b   :  { %v3842_v51 = vld [vmem:[#allocation7 + $0x128] ss:$16 sps:$4 sm:$0xff]   ;;  %v3845_v52 = vld [vmem:[#allocation7 + $0x140] ss:$16 sps:$4 sm:$0xff]   ;;  %v3850_v53 = vld [vmem:[#allocation7 + $0x14c] ss:$16 sps:$4 sm:$0xff]  }
  0x6c   :  { %v3853_v54 = vld [vmem:[#allocation7 + $0x164] ss:$16 sps:$4 sm:$0xff]   ;;  %v3848_v55 = vld [vmem:[#allocation7 + $0x148] ss:$16 sps:$4 sm:$0xff]   ;;  %v3851_v56 = vld [vmem:[#allocation7 + $0x160] ss:$16 sps:$4 sm:$0xff]  }
  0x6d   :  { %1063 = vmatpush1.bf16.msra.mxu0 %v3797_v20  ;;  %1145 = vmatpush1.bf16.msra.mxu1 %v3800_v23  ;;  %v3856_v57 = vld [vmem:[#allocation7 + $0x16c] ss:$16 sps:$4 sm:$0xff]   ;;  %v3859_v58 = vld [vmem:[#allocation7 + $0x184] ss:$16 sps:$4 sm:$0xff]   ;;  %v3854_v59 = vld [vmem:[#allocation7 + $0x168] ss:$16 sps:$4 sm:$0xff]  }
  0x6e   :  { %1064 = vmatprep.subr.bf16.mxu0 %v3805_v22  ;;  %1146 = vmatprep.subr.bf16.mxu1 %v3808_v25  ;;  %v3857_v60 = vld [vmem:[#allocation7 + $0x180] ss:$16 sps:$4 sm:$0xff]   ;;  %v3862_v61 = vld [vmem:[#allocation7 + $0x18c] ss:$16 sps:$4 sm:$0xff]   ;;  %v3865_v62 = vld [vmem:[#allocation7 + $0x1a4] ss:$16 sps:$4 sm:$0xff]  }
  0x6f   :  { %v3860_v63 = vld [vmem:[#allocation7 + $0x188] ss:$16 sps:$4 sm:$0xff]   ;;  %v3863_v0 = vld [vmem:[#allocation7 + $0x1a0] ss:$16 sps:$4 sm:$0xff]   ;;  %v3868_v1 = vld [vmem:[#allocation7 + $0x1ac] ss:$16 sps:$4 sm:$0xff]  }
  0x70   :  { %v3866_v2 = vld [vmem:[#allocation7 + $0x1a8] ss:$16 sps:$4 sm:$0xff]   ;;  %v3871_v3 = vld [vmem:[#allocation7 + $0x1c4] ss:$16 sps:$4 sm:$0xff]   ;;  %v3874_v4 = vld [vmem:[#allocation7 + $0x1cc] ss:$16 sps:$4 sm:$0xff]  }
  0x71   :  { %1065 = vmatpush1.bf16.msra.mxu0 %v3803_v24  ;;  %1147 = vmatpush1.bf16.msra.mxu1 %v3806_v27  ;;  %v3869_v5 = vld [vmem:[#allocation7 + $0x1c0] ss:$16 sps:$4 sm:$0xff]   ;;  %v3872_v6 = vld [vmem:[#allocation7 + $0x1c8] ss:$16 sps:$4 sm:$0xff]   ;;  %v3877_v7 = vld [vmem:[#allocation7 + $0x1e4] ss:$16 sps:$4 sm:$0xff]  }
  0x72   :  { %1066 = vmatprep.subr.bf16.mxu0 %v3811_v26  ;;  %1148 = vmatprep.subr.bf16.mxu1 %v3814_v29  ;;  %v3880_v8 = vld [vmem:[#allocation7 + $0x1ec] ss:$16 sps:$4 sm:$0xff]   ;;  %v3875_v9 = vld [vmem:[#allocation7 + $0x1e0] ss:$16 sps:$4 sm:$0xff]   ;;  %v3878_v10 = vld [vmem:[#allocation7 + $0x1e8] ss:$16 sps:$4 sm:$0xff]  }
  0x73   :  { %v3883_v11 = vld [vmem:[#allocation7 + $0x204] ss:$16 sps:$4 sm:$0xff]   ;;  %v3886_v12 = vld [vmem:[#allocation7 + $0x20c] ss:$16 sps:$4 sm:$0xff]   ;;  %v4269_v14 = vshrl.u32 %v110_v13, 7 }
  0x74   :  { %v4277_v16 = vld [vmem:[%s4413_s2] sm:$0xf]  ;;  %v3940_v13 = vld [vmem:[#allocation7 + $0x32c] ss:$16 sps:$4 sm:$0xff]  }
  0x75   :  { %1067 = vmatpush1.bf16.msra.mxu0 %v3809_v28  ;;  %1149 = vmatpush1.bf16.msra.mxu1 %v3812_v31  ;;  %v4272_v15 = vsub.s32 0, %v4269_v14  ;;  %v4280_v17 = vsub.s32 1, %v4269_v14  ;;  %v4285_v19 = vsub.s32 3, %v4269_v14  ;;  %vm1224_vm1 = vcmp.lt.s32.totalorder %v4269_v14, 2 }
  0x76   :  { %1068 = vmatprep.subr.bf16.mxu0 %v3817_v30  ;;  %1150 = vmatprep.subr.bf16.mxu1 %v3820_v33 }
  0x77   :  { %v113_v18 = vrot.slane %v4277_v16, %v4272_v15  ;;  %v117_v20 = vrot.slane %v4277_v16, %v4280_v17  ;;  %v125_v24 = vrot.slane %v4277_v16, %v4285_v19 }
  0x79   :  { %1069 = vmatpush1.bf16.msra.mxu0 %v3815_v32  ;;  %1151 = vmatpush1.bf16.msra.mxu1 %v3818_v35 }
  0x7a   :  { %1070 = vmatprep.subr.bf16.mxu0 %v3823_v34  ;;  %1152 = vmatprep.subr.bf16.mxu1 %v3826_v37 }
  0x7d   :  { %1071 = vmatpush1.bf16.msra.mxu0 %v3821_v36  ;;  %1153 = vmatpush1.bf16.msra.mxu1 %v3824_v39  ;;  %v3881_v39 = vld [vmem:[#allocation7 + $0x200] ss:$16 sps:$4 sm:$0xff]  }
  0x7e   :  { %1072 = vmatprep.subr.bf16.mxu0 %v3829_v38  ;;  %1154 = vmatprep.subr.bf16.mxu1 %v3832_v41 }
  0x81   :  { %1073 = vmatpush1.bf16.msra.mxu0 %v3827_v40  ;;  %1155 = vmatpush1.bf16.msra.mxu1 %v3830_v43  ;;  %v3884_v40 = vld [vmem:[#allocation7 + $0x208] ss:$16 sps:$4 sm:$0xff]   ;;  %v3892_v43 = vld [vmem:[#allocation7 + $0x22c] ss:$16 sps:$4 sm:$0xff]  }
  0x82   :  { %1074 = vmatprep.subr.bf16.mxu0 %v3835_v42  ;;  %1156 = vmatprep.subr.bf16.mxu1 %v3838_v45  ;;  %v3889_v42 = vld [vmem:[#allocation7 + $0x224] ss:$16 sps:$4 sm:$0xff]  }
  0x85   :  { %1075 = vmatpush1.bf16.msra.mxu0 %v3833_v44  ;;  %1157 = vmatpush1.bf16.msra.mxu1 %v3836_v47  ;;  %v3890_v47 = vld [vmem:[#allocation7 + $0x228] ss:$16 sps:$4 sm:$0xff]  }
  0x86   :  { %1076 = vmatprep.subr.bf16.mxu0 %v3841_v46  ;;  %1158 = vmatprep.subr.bf16.mxu1 %v3844_v49  ;;  %v3887_v46 = vld [vmem:[#allocation7 + $0x220] ss:$16 sps:$4 sm:$0xff]   ;;  %v3898_v49 = vld [vmem:[#allocation7 + $0x24c] ss:$16 sps:$4 sm:$0xff]  }
  0x89   :  { %1077 = vmatpush1.bf16.msra.mxu0 %v3839_v48  ;;  %1159 = vmatpush1.bf16.msra.mxu1 %v3842_v51  ;;  %v3895_v48 = vld [vmem:[#allocation7 + $0x244] ss:$16 sps:$4 sm:$0xff]   ;;  %v3896_v51 = vld [vmem:[#allocation7 + $0x248] ss:$16 sps:$4 sm:$0xff]  }
  0x8a   :  { %1078 = vmatprep.subr.bf16.mxu0 %v3847_v50  ;;  %1160 = vmatprep.subr.bf16.mxu1 %v3850_v53  ;;  %v3893_v50 = vld [vmem:[#allocation7 + $0x240] ss:$16 sps:$4 sm:$0xff]   ;;  %v3904_v53 = vld [vmem:[#allocation7 + $0x26c] ss:$16 sps:$4 sm:$0xff]  }
  0x8d   :  { %1079 = vmatpush1.bf16.msra.mxu0 %v3845_v52  ;;  %1161 = vmatpush1.bf16.msra.mxu1 %v3848_v55  ;;  %v3901_v52 = vld [vmem:[#allocation7 + $0x264] ss:$16 sps:$4 sm:$0xff]   ;;  %v3902_v55 = vld [vmem:[#allocation7 + $0x268] ss:$16 sps:$4 sm:$0xff]  }
  0x8e   :  { %1080 = vmatprep.subr.bf16.mxu0 %v3853_v54  ;;  %1162 = vmatprep.subr.bf16.mxu1 %v3856_v57  ;;  %v3899_v54 = vld [vmem:[#allocation7 + $0x260] ss:$16 sps:$4 sm:$0xff]   ;;  %v3910_v57 = vld [vmem:[#allocation7 + $0x28c] ss:$16 sps:$4 sm:$0xff]  }
  0x91   :  { %1081 = vmatpush1.bf16.msra.mxu0 %v3851_v56  ;;  %1163 = vmatpush1.bf16.msra.mxu1 %v3854_v59  ;;  %v3907_v56 = vld [vmem:[#allocation7 + $0x284] ss:$16 sps:$4 sm:$0xff]   ;;  %v3908_v59 = vld [vmem:[#allocation7 + $0x288] ss:$16 sps:$4 sm:$0xff]  }
  0x92   :  { %1082 = vmatprep.subr.bf16.mxu0 %v3859_v58  ;;  %1164 = vmatprep.subr.bf16.mxu1 %v3862_v61  ;;  %v3905_v58 = vld [vmem:[#allocation7 + $0x280] ss:$16 sps:$4 sm:$0xff]   ;;  %v3916_v61 = vld [vmem:[#allocation7 + $0x2ac] ss:$16 sps:$4 sm:$0xff]  }
  0x95   :  { %1083 = vmatpush1.bf16.msra.mxu0 %v3857_v60  ;;  %1165 = vmatpush1.bf16.msra.mxu1 %v3860_v63  ;;  %v3913_v60 = vld [vmem:[#allocation7 + $0x2a4] ss:$16 sps:$4 sm:$0xff]   ;;  %v3914_v63 = vld [vmem:[#allocation7 + $0x2a8] ss:$16 sps:$4 sm:$0xff]  }
  0x96   :  { %1084 = vmatprep.subr.bf16.mxu0 %v3865_v62  ;;  %1166 = vmatprep.subr.bf16.mxu1 %v3868_v1  ;;  %v3911_v62 = vld [vmem:[#allocation7 + $0x2a0] ss:$16 sps:$4 sm:$0xff]   ;;  %v3922_v1 = vld [vmem:[#allocation7 + $0x2cc] ss:$16 sps:$4 sm:$0xff]  }
  0x99   :  { %1085 = vmatpush1.bf16.msra.mxu0 %v3863_v0  ;;  %1167 = vmatpush1.bf16.msra.mxu1 %v3866_v2  ;;  %v3919_v0 = vld [vmem:[#allocation7 + $0x2c4] ss:$16 sps:$4 sm:$0xff]   ;;  %v3917_v2 = vld [vmem:[#allocation7 + $0x2c0] ss:$16 sps:$4 sm:$0xff]  }
  0x9a   :  { %1086 = vmatprep.subr.bf16.mxu0 %v3871_v3  ;;  %1168 = vmatprep.subr.bf16.mxu1 %v3874_v4  ;;  %v3920_v3 = vld [vmem:[#allocation7 + $0x2c8] ss:$16 sps:$4 sm:$0xff]   ;;  %v3925_v4 = vld [vmem:[#allocation7 + $0x2e4] ss:$16 sps:$4 sm:$0xff]  }
  0x9d   :  { %1087 = vmatpush1.bf16.msra.mxu0 %v3869_v5  ;;  %1169 = vmatpush1.bf16.msra.mxu1 %v3872_v6  ;;  %v3928_v5 = vld [vmem:[#allocation7 + $0x2ec] ss:$16 sps:$4 sm:$0xff]   ;;  %v3923_v6 = vld [vmem:[#allocation7 + $0x2e0] ss:$16 sps:$4 sm:$0xff]  }
  0x9e   :  { %1088 = vmatprep.subr.bf16.mxu0 %v3877_v7  ;;  %1170 = vmatprep.subr.bf16.mxu1 %v3880_v8  ;;  %v3926_v7 = vld [vmem:[#allocation7 + $0x2e8] ss:$16 sps:$4 sm:$0xff]   ;;  %v3931_v8 = vld [vmem:[#allocation7 + $0x304] ss:$16 sps:$4 sm:$0xff]  }
  0xa1   :  { %1089 = vmatpush1.bf16.msra.mxu0 %v3875_v9  ;;  %1171 = vmatpush1.bf16.msra.mxu1 %v3878_v10  ;;  %v3934_v9 = vld [vmem:[#allocation7 + $0x30c] ss:$16 sps:$4 sm:$0xff]   ;;  %v3929_v10 = vld [vmem:[#allocation7 + $0x300] ss:$16 sps:$4 sm:$0xff]  }
  0xa2   :  { %1099 = vmatprep.subr.bf16.mxu0 %v3883_v11  ;;  %1181 = vmatprep.subr.bf16.mxu1 %v3886_v12  ;;  %v3932_v11 = vld [vmem:[#allocation7 + $0x308] ss:$16 sps:$4 sm:$0xff]   ;;  %v3937_v12 = vld [vmem:[#allocation7 + $0x324] ss:$16 sps:$4 sm:$0xff]  }
 0x137   :  { %v208_v21 = vpop.f32.mrb[0].mxu0  ;;  %v4291_v29 = vpop.f32.mrb[0].mxu1 }
 0x138   :  { %v209_v22 = vadd.f32 %v208_v21, %v113_v18  ;;  %v210_v23 = vpop.f32.mrb[1].mxu0  ;;  %v251_v31 = vpop.f32.mrb[1].mxu1  ;;  %v3935_v18 = vld [vmem:[#allocation7 + $0x320] ss:$16 sps:$4 sm:$0xff]   ;;  %v3943_v21 = vld [vmem:[#allocation7 + $0x344] ss:$16 sps:$4 sm:$0xff]  }
 0x139   :  { %v211_v25 = vadd.f32 %v210_v23, %v117_v20  ;;  %v212_v26 = vpop.f32.mrb[2].mxu0  ;;  %v252_v33 = vadd.f32 %v251_v31, %v125_v24  ;;  %v253_v34 = vpop.f32.mrb[2].mxu1  ;;  %v3938_v20 = vld [vmem:[#allocation7 + $0x328] ss:$16 sps:$4 sm:$0xff]   ;;  %v3941_v23 = vld [vmem:[#allocation7 + $0x340] ss:$16 sps:$4 sm:$0xff]  }
 0x13a   :  { %v256_v27 = vmul.f32 0.2, %v209_v22  ;;  %v213_v28 = vpop.f32.mrb[3].mxu0  ;;  %v254_v36 = vpop.f32.mrb[3].mxu1  ;;  %v3944_v24 = vld [vmem:[#allocation7 + $0x348] ss:$16 sps:$4 sm:$0xff]  }
 0x13b   :  { %v257_v30 = vmul.f32 0.2, %v211_v25  ;;  %v259_v37 = vmul.f32 0.2, %v252_v33  ;;  %v3952_v26 = vld [vmem:[#allocation7 + $0x36c] ss:$16 sps:$4 sm:$0xff]  }
 0x13c   :  { %v260_v32 = vmax.f32 %v209_v22, %v256_v27  ;;  %v3946_v22 = vld [vmem:[#allocation7 + $0x34c] ss:$16 sps:$4 sm:$0xff]   ;;  %v3947_v27 = vld [vmem:[#allocation7 + $0x360] ss:$16 sps:$4 sm:$0xff]   ;;  %v3950_v28 = vld [vmem:[#allocation7 + $0x368] ss:$16 sps:$4 sm:$0xff]  }
 0x13d   :  { %v261_v35 = vmax.f32 %v211_v25, %v257_v30  ;;  %v263_v44 = vmax.f32 %v252_v33, %v259_v37  ;;  %v3949_v25 = vld [vmem:[#allocation7 + $0x364] ss:$16 sps:$4 sm:$0xff]   ;;  %v3958_v31 = vld [vmem:[#allocation7 + $0x38c] ss:$16 sps:$4 sm:$0xff]   ;;  %v3953_v33 = vld [vmem:[#allocation7 + $0x380] ss:$16 sps:$4 sm:$0xff]  }
 0x13e   :  { %v264_v41 = vpack.c.bf16 %v260_v32, %v260_v32  ;;  %v3955_v30 = vld [vmem:[#allocation7 + $0x384] ss:$16 sps:$4 sm:$0xff]   ;;  %v4294_v32 = vsub.s32 2, %v4269_v14  ;;  %v3956_v34 = vld [vmem:[#allocation7 + $0x388] ss:$16 sps:$4 sm:$0xff]  }
 0x13f   :  { %v265_v38 = vpack.c.bf16 %v261_v35, %v261_v35  ;;  %v267_v45 = vpack.c.bf16 %v263_v44, %v263_v44  ;;  %v3961_v36 = vld [vmem:[#allocation7 + $0x3a4] ss:$16 sps:$4 sm:$0xff]   ;;  %v3964_v37 = vld [vmem:[#allocation7 + $0x3ac] ss:$16 sps:$4 sm:$0xff]   ;;  %v3968_v44 = vld [vmem:[#allocation7 + $0x3c8] ss:$16 sps:$4 sm:$0xff]  }
 0x140   :  { %v121_v35 = vrot.slane %v4277_v16, %v4294_v32  ;;  %v3973_v16 = vld [vmem:[#allocation7 + $0x3e4] ss:$16 sps:$4 sm:$0xff]  }
 0x141   :  { %1090 = vmatprep.mubr.bf16.mxu0 %v265_v38  ;;  %1172 = vmatprep.mubr.bf16.mxu1 %v265_v38  ;;  %v3959_v38 = vld [vmem:[#allocation7 + $0x3a0] ss:$16 sps:$4 sm:$0xff]  }
 0x142   :  { %1091 = vmatmul.mubr.bf16.vlgmr.msra.gmra.mrb[4].mxu0 %v264_v41  ;;  %1173 = vmatmul.mubr.bf16.vlgmr.msra.gmra.mrb[4].mxu1 %v264_v41  ;;  %v3967_v41 = vld [vmem:[#allocation7 + $0x3c4] ss:$16 sps:$4 sm:$0xff]  }
 0x143   :  { %1100 = vmatpush1.bf16.msra.mxu0 %v3881_v39  ;;  %1182 = vmatpush1.bf16.msra.mxu1 %v3884_v40  ;;  %v3962_v39 = vld [vmem:[#allocation7 + $0x3a8] ss:$16 sps:$4 sm:$0xff]   ;;  %v250_v40 = vadd.f32 %v4291_v29, %v121_v35  ;;  %v1432_v35 = vld [vmem:[#allocation10 + $0x148] sm:$0xff] }
 0x144   :  { %1101 = vmatprep.subr.bf16.mxu0 %v3889_v42  ;;  %1183 = vmatprep.subr.bf16.mxu1 %v3892_v43  ;;  %v3970_v42 = vld [vmem:[#allocation7 + $0x3cc] ss:$16 sps:$4 sm:$0xff]   ;;  %v3965_v43 = vld [vmem:[#allocation7 + $0x3c0] ss:$16 sps:$4 sm:$0xff]  }
 0x145   :  { %1131 = vmatprep.mubr.bf16.mxu0 %v267_v45  ;;  %1213 = vmatprep.mubr.bf16.mxu1 %v267_v45  ;;  %v258_v45 = vmul.f32 0.2, %v250_v40 }
 0x147   :  { %1102 = vmatpush1.bf16.msra.mxu0 %v3887_v46  ;;  %1184 = vmatpush1.bf16.msra.mxu1 %v3890_v47  ;;  %v3976_v46 = vld [vmem:[#allocation7 + $0x3ec] ss:$16 sps:$4 sm:$0xff]   ;;  %v3971_v47 = vld [vmem:[#allocation7 + $0x3e0] ss:$16 sps:$4 sm:$0xff]  }
 0x148   :  { %1103 = vmatprep.subr.bf16.mxu0 %v3895_v48  ;;  %1185 = vmatprep.subr.bf16.mxu1 %v3898_v49  ;;  %v3974_v48 = vld [vmem:[#allocation7 + $0x3e8] ss:$16 sps:$4 sm:$0xff]   ;;  %v262_v49 = vmax.f32 %v250_v40, %v258_v45  ;;  %v1444_v45 = vld [vmem:[#allocation10 + $0x1a8] sm:$0xff] }
 0x14a   :  { %v266_v29 = vpack.c.bf16 %v262_v49, %v262_v49  ;;  %v1451_v49 = vld [vmem:[#allocation10 + $0x1e0] sm:$0xff] }
 0x14b   :  { %1104 = vmatpush1.bf16.msra.mxu0 %v3893_v50  ;;  %1186 = vmatpush1.bf16.msra.mxu1 %v3896_v51  ;;  %v1391_v50 = vld [vmem:[#allocation10] sm:$0xff] }
 0x14c   :  { %1105 = vmatprep.subr.bf16.mxu0 %v3901_v52  ;;  %1187 = vmatprep.subr.bf16.mxu1 %v3904_v53  ;;  %v1395_v51 = vld [vmem:[#allocation10 + $0x20] sm:$0xff]  ;;  %v1392_v52 = vld [vmem:[#allocation10 + $0x8] sm:$0xff] }
 0x14d   :  { %v3470_v53 = vcombine.high %v1391_v50, %v1395_v51 }
 0x14f   :  { %1106 = vmatpush1.bf16.msra.mxu0 %v3899_v54  ;;  %1188 = vmatpush1.bf16.msra.mxu1 %v3902_v55  ;;  %v1396_v54 = vld [vmem:[#allocation10 + $0x28] sm:$0xff]  ;;  %v3469_v55 = vcombine.low %v1391_v50, %v1395_v51 }
 0x150   :  { %1107 = vmatprep.subr.bf16.mxu0 %v3907_v56  ;;  %1189 = vmatprep.subr.bf16.mxu1 %v3910_v57  ;;  %v3471_v56 = vcombine.low %v1392_v52, %v1396_v54  ;;  %v3472_v57 = vcombine.high %v1392_v52, %v1396_v54  ;;  %v1452_v51 = vld [vmem:[#allocation10 + $0x1e8] sm:$0xff] }
 0x153   :  { %1108 = vmatpush1.bf16.msra.mxu0 %v3905_v58  ;;  %1190 = vmatpush1.bf16.msra.mxu1 %v3908_v59  ;;  %v1399_v58 = vld [vmem:[#allocation10 + $0x40] sm:$0xff] }
 0x154   :  { %1109 = vmatprep.subr.bf16.mxu0 %v3913_v60  ;;  %1191 = vmatprep.subr.bf16.mxu1 %v3916_v61  ;;  %v1403_v59 = vld [vmem:[#allocation10 + $0x60] sm:$0xff]  ;;  %v1400_v60 = vld [vmem:[#allocation10 + $0x48] sm:$0xff] }
 0x155   :  { %v3478_v61 = vcombine.high %v1399_v58, %v1403_v59 }
 0x157   :  { %1110 = vmatpush1.bf16.msra.mxu0 %v3911_v62  ;;  %1192 = vmatpush1.bf16.msra.mxu1 %v3914_v63  ;;  %v1404_v62 = vld [vmem:[#allocation10 + $0x68] sm:$0xff]  ;;  %v3477_v63 = vcombine.low %v1399_v58, %v1403_v59 }
 0x158   :  { %1111 = vmatprep.subr.bf16.mxu0 %v3919_v0  ;;  %1193 = vmatprep.subr.bf16.mxu1 %v3922_v1  ;;  %v3479_v0 = vcombine.low %v1400_v60, %v1404_v62  ;;  %v3480_v1 = vcombine.high %v1400_v60, %v1404_v62  ;;  %v1460_v59 = vld [vmem:[#allocation10 + $0x228] sm:$0xff] }
 0x15b   :  { %1112 = vmatpush1.bf16.msra.mxu0 %v3917_v2  ;;  %1194 = vmatpush1.bf16.msra.mxu1 %v3920_v3  ;;  %v1407_v2 = vld [vmem:[#allocation10 + $0x80] sm:$0xff] }
 0x15c   :  { %1113 = vmatprep.subr.bf16.mxu0 %v3925_v4  ;;  %1195 = vmatprep.subr.bf16.mxu1 %v3928_v5  ;;  %v1411_v3 = vld [vmem:[#allocation10 + $0xa0] sm:$0xff]  ;;  %v1408_v4 = vld [vmem:[#allocation10 + $0x88] sm:$0xff] }
 0x15d   :  { %v3486_v5 = vcombine.high %v1407_v2, %v1411_v3 }
 0x15f   :  { %1114 = vmatpush1.bf16.msra.mxu0 %v3923_v6  ;;  %1196 = vmatpush1.bf16.msra.mxu1 %v3926_v7  ;;  %v1412_v6 = vld [vmem:[#allocation10 + $0xa8] sm:$0xff]  ;;  %v3485_v7 = vcombine.low %v1407_v2, %v1411_v3 }
 0x160   :  { %1115 = vmatprep.subr.bf16.mxu0 %v3931_v8  ;;  %1197 = vmatprep.subr.bf16.mxu1 %v3934_v9  ;;  %v3487_v8 = vcombine.low %v1408_v4, %v1412_v6  ;;  %v3488_v9 = vcombine.high %v1408_v4, %v1412_v6  ;;  %v1468_v3 = vld [vmem:[#allocation10 + $0x268] sm:$0xff] }
 0x163   :  { %1116 = vmatpush1.bf16.msra.mxu0 %v3929_v10  ;;  %1198 = vmatpush1.bf16.msra.mxu1 %v3932_v11  ;;  %v1415_v10 = vld [vmem:[#allocation10 + $0xc0] sm:$0xff] }
 0x164   :  { %1117 = vmatprep.subr.bf16.mxu0 %v3937_v12  ;;  %1199 = vmatprep.subr.bf16.mxu1 %v3940_v13  ;;  %v1419_v11 = vld [vmem:[#allocation10 + $0xe0] sm:$0xff]  ;;  %v1416_v12 = vld [vmem:[#allocation10 + $0xc8] sm:$0xff] }
 0x165   :  { %v3494_v13 = vcombine.high %v1415_v10, %v1419_v11 }
 0x167   :  { %1118 = vmatpush1.bf16.msra.mxu0 %v3935_v18  ;;  %1200 = vmatpush1.bf16.msra.mxu1 %v3938_v20  ;;  %v1420_v18 = vld [vmem:[#allocation10 + $0xe8] sm:$0xff]  ;;  %v3493_v20 = vcombine.low %v1415_v10, %v1419_v11 }
 0x168   :  { %1119 = vmatprep.subr.bf16.mxu0 %v3943_v21  ;;  %1201 = vmatprep.subr.bf16.mxu1 %v3946_v22  ;;  %v3495_v21 = vcombine.low %v1416_v12, %v1420_v18  ;;  %v3496_v22 = vcombine.high %v1416_v12, %v1420_v18  ;;  %v1476_v11 = vld [vmem:[#allocation10 + $0x2a8] sm:$0xff] }
 0x16b   :  { %1120 = vmatpush1.bf16.msra.mxu0 %v3941_v23  ;;  %1202 = vmatpush1.bf16.msra.mxu1 %v3944_v24  ;;  %v1423_v23 = vld [vmem:[#allocation10 + $0x100] sm:$0xff] }
 0x16c   :  { %1121 = vmatprep.subr.bf16.mxu0 %v3949_v25  ;;  %1203 = vmatprep.subr.bf16.mxu1 %v3952_v26  ;;  %v1427_v24 = vld [vmem:[#allocation10 + $0x120] sm:$0xff]  ;;  %v1424_v25 = vld [vmem:[#allocation10 + $0x108] sm:$0xff] }
 0x16d   :  { %v3502_v26 = vcombine.high %v1423_v23, %v1427_v24 }
 0x16f   :  { %1122 = vmatpush1.bf16.msra.mxu0 %v3947_v27  ;;  %1204 = vmatpush1.bf16.msra.mxu1 %v3950_v28  ;;  %v1428_v27 = vld [vmem:[#allocation10 + $0x128] sm:$0xff]  ;;  %v3501_v28 = vcombine.low %v1423_v23, %v1427_v24 }
 0x170   :  { %1123 = vmatprep.subr.bf16.mxu0 %v3955_v30  ;;  %1205 = vmatprep.subr.bf16.mxu1 %v3958_v31  ;;  %v3503_v30 = vcombine.low %v1424_v25, %v1428_v27  ;;  %v3504_v31 = vcombine.high %v1424_v25, %v1428_v27  ;;  %v1484_v24 = vld [vmem:[#allocation10 + $0x2e8] sm:$0xff] }
 0x173   :  { %1124 = vmatpush1.bf16.msra.mxu0 %v3953_v33  ;;  %1206 = vmatpush1.bf16.msra.mxu1 %v3956_v34  ;;  %v1431_v33 = vld [vmem:[#allocation10 + $0x140] sm:$0xff] }
 0x174   :  { %1125 = vmatprep.subr.bf16.mxu0 %v3961_v36  ;;  %1207 = vmatprep.subr.bf16.mxu1 %v3964_v37  ;;  %v1435_v34 = vld [vmem:[#allocation10 + $0x160] sm:$0xff]  ;;  %v1436_v37 = vld [vmem:[#allocation10 + $0x168] sm:$0xff] }
 0x175   :  { %v3510_v36 = vcombine.high %v1431_v33, %v1435_v34  ;;  %v3512_v40 = vcombine.high %v1432_v35, %v1436_v37 }
 0x177   :  { %1126 = vmatpush1.bf16.msra.mxu0 %v3959_v38  ;;  %1208 = vmatpush1.bf16.msra.mxu1 %v3962_v39  ;;  %v3509_v38 = vcombine.low %v1431_v33, %v1435_v34  ;;  %v3511_v39 = vcombine.low %v1432_v35, %v1436_v37  ;;  %v1492_v34 = vld [vmem:[#allocation10 + $0x328] sm:$0xff] }
 0x178   :  { %1127 = vmatprep.subr.bf16.mxu0 %v3967_v41  ;;  %1209 = vmatprep.subr.bf16.mxu1 %v3970_v42  ;;  %v1439_v41 = vld [vmem:[#allocation10 + $0x180] sm:$0xff] }
 0x179   :  { %v1443_v42 = vld [vmem:[#allocation10 + $0x1a0] sm:$0xff] }
 0x17b   :  { %1128 = vmatpush1.bf16.msra.mxu0 %v3965_v43  ;;  %1210 = vmatpush1.bf16.msra.mxu1 %v3968_v44  ;;  %v1440_v43 = vld [vmem:[#allocation10 + $0x188] sm:$0xff]  ;;  %v3518_v44 = vcombine.high %v1439_v41, %v1443_v42 }
 0x17c   :  { %1129 = vmatprep.subr.bf16.mxu0 %v3973_v16  ;;  %1211 = vmatprep.subr.bf16.mxu1 %v3976_v46  ;;  %v3517_v16 = vcombine.low %v1439_v41, %v1443_v42  ;;  %v3519_v46 = vcombine.low %v1440_v43, %v1444_v45  ;;  %v1500_v42 = vld [vmem:[#allocation10 + $0x368] sm:$0xff] }
 0x17f   :  { %1130 = vmatpush1.bf16.msra.mxu0 %v3971_v47  ;;  %1212 = vmatpush1.bf16.msra.mxu1 %v3974_v48  ;;  %v3520_v47 = vcombine.high %v1440_v43, %v1444_v45  ;;  %v1447_v48 = vld [vmem:[#allocation10 + $0x1c0] sm:$0xff] }
 0x180   :  { %2969 = vmatprep.subr.bf16.mxu0 %v3470_v53  ;;  %3051 = vmatprep.subr.bf16.mxu1 %v3472_v57  ;;  %v3526_v50 = vcombine.high %v1447_v48, %v1451_v49  ;;  %v3525_v52 = vcombine.low %v1447_v48, %v1451_v49  ;;  %v1456_v57 = vld [vmem:[#allocation10 + $0x208] sm:$0xff] }
 0x181   :  { %v3536_v62 = vcombine.high %v1456_v57, %v1460_v59  ;;  %v1508_v49 = vld [vmem:[#allocation10 + $0x3a8] sm:$0xff] }
 0x182   :  { %1132 = vmatmul.mubr.bf16.vlgmr.msra.gmra.mrb[4].mxu0 %v266_v29  ;;  %1214 = vmatmul.mubr.bf16.vlgmr.msra.gmra.mrb[4].mxu1 %v266_v29  ;;  %v1448_v29 = vld [vmem:[#allocation10 + $0x1c8] sm:$0xff] }
 0x183   :  { %2970 = vmatpush1.bf16.msra.mxu0 %v3469_v55  ;;  %3052 = vmatpush1.bf16.msra.mxu1 %v3471_v56  ;;  %v3527_v53 = vcombine.low %v1448_v29, %v1452_v51  ;;  %v3528_v54 = vcombine.high %v1448_v29, %v1452_v51  ;;  %v1455_v55 = vld [vmem:[#allocation10 + $0x200] sm:$0xff] }
 0x184   :  { %2971 = vmatprep.subr.bf16.mxu0 %v3478_v61  ;;  %3053 = vmatprep.subr.bf16.mxu1 %v3480_v1  ;;  %v1459_v56 = vld [vmem:[#allocation10 + $0x220] sm:$0xff]  ;;  %v3535_v61 = vcombine.low %v1456_v57, %v1460_v59  ;;  %v1464_v1 = vld [vmem:[#allocation10 + $0x248] sm:$0xff] }
 0x185   :  { %v3534_v58 = vcombine.high %v1455_v55, %v1459_v56  ;;  %v3533_v60 = vcombine.low %v1455_v55, %v1459_v56  ;;  %v3544_v6 = vcombine.high %v1464_v1, %v1468_v3  ;;  %v1516_v57 = vld [vmem:[#allocation10 + $0x3e8] sm:$0xff] }
 0x187   :  { %2972 = vmatpush1.bf16.msra.mxu0 %v3477_v63  ;;  %3054 = vmatpush1.bf16.msra.mxu1 %v3479_v0  ;;  %v1463_v63 = vld [vmem:[#allocation10 + $0x240] sm:$0xff] }
 0x188   :  { %2973 = vmatprep.subr.bf16.mxu0 %v3486_v5  ;;  %3055 = vmatprep.subr.bf16.mxu1 %v3488_v9  ;;  %v1467_v0 = vld [vmem:[#allocation10 + $0x260] sm:$0xff]  ;;  %v3543_v5 = vcombine.low %v1464_v1, %v1468_v3  ;;  %v1472_v9 = vld [vmem:[#allocation10 + $0x288] sm:$0xff] }
 0x189   :  { %v3542_v2 = vcombine.high %v1463_v63, %v1467_v0  ;;  %v3541_v4 = vcombine.low %v1463_v63, %v1467_v0  ;;  %v3552_v18 = vcombine.high %v1472_v9, %v1476_v11  ;;  %v4307_v0 = vld [vmem:[#allocation10 + $0x428] sm:$0xff] }
 0x18b   :  { %2974 = vmatpush1.bf16.msra.mxu0 %v3485_v7  ;;  %3056 = vmatpush1.bf16.msra.mxu1 %v3487_v8  ;;  %v1471_v7 = vld [vmem:[#allocation10 + $0x280] sm:$0xff] }
 0x18c   :  { %2975 = vmatprep.subr.bf16.mxu0 %v3494_v13  ;;  %3057 = vmatprep.subr.bf16.mxu1 %v3496_v22  ;;  %v1475_v8 = vld [vmem:[#allocation10 + $0x2a0] sm:$0xff]  ;;  %v3551_v13 = vcombine.low %v1472_v9, %v1476_v11  ;;  %v1480_v22 = vld [vmem:[#allocation10 + $0x2c8] sm:$0xff] }
 0x18d   :  { %v3550_v10 = vcombine.high %v1471_v7, %v1475_v8  ;;  %v3549_v12 = vcombine.low %v1471_v7, %v1475_v8  ;;  %v3560_v27 = vcombine.high %v1480_v22, %v1484_v24 }
 0x18f   :  { %2976 = vmatpush1.bf16.msra.mxu0 %v3493_v20  ;;  %3058 = vmatpush1.bf16.msra.mxu1 %v3495_v21  ;;  %v1479_v20 = vld [vmem:[#allocation10 + $0x2c0] sm:$0xff] }
 0x190   :  { %2977 = vmatprep.subr.bf16.mxu0 %v3502_v26  ;;  %3059 = vmatprep.subr.bf16.mxu1 %v3504_v31  ;;  %v1483_v21 = vld [vmem:[#allocation10 + $0x2e0] sm:$0xff]  ;;  %v3559_v26 = vcombine.low %v1480_v22, %v1484_v24  ;;  %v1488_v31 = vld [vmem:[#allocation10 + $0x308] sm:$0xff] }
 0x191   :  { %v3558_v23 = vcombine.high %v1479_v20, %v1483_v21  ;;  %v3557_v25 = vcombine.low %v1479_v20, %v1483_v21  ;;  %v3568_v37 = vcombine.high %v1488_v31, %v1492_v34 }
 0x193   :  { %2978 = vmatpush1.bf16.msra.mxu0 %v3501_v28  ;;  %3060 = vmatpush1.bf16.msra.mxu1 %v3503_v30  ;;  %v1487_v28 = vld [vmem:[#allocation10 + $0x300] sm:$0xff] }
 0x194   :  { %2979 = vmatprep.subr.bf16.mxu0 %v3510_v36  ;;  %3061 = vmatprep.subr.bf16.mxu1 %v3512_v40  ;;  %v1491_v30 = vld [vmem:[#allocation10 + $0x320] sm:$0xff]  ;;  %v3567_v36 = vcombine.low %v1488_v31, %v1492_v34  ;;  %v1496_v40 = vld [vmem:[#allocation10 + $0x348] sm:$0xff] }
 0x195   :  { %v3566_v33 = vcombine.high %v1487_v28, %v1491_v30  ;;  %v3565_v35 = vcombine.low %v1487_v28, %v1491_v30  ;;  %v3576_v45 = vcombine.high %v1496_v40, %v1500_v42 }
 0x197   :  { %2980 = vmatpush1.bf16.msra.mxu0 %v3509_v38  ;;  %3062 = vmatpush1.bf16.msra.mxu1 %v3511_v39  ;;  %v1495_v38 = vld [vmem:[#allocation10 + $0x340] sm:$0xff] }
 0x198   :  { %2981 = vmatprep.subr.bf16.mxu0 %v3518_v44  ;;  %3063 = vmatprep.subr.bf16.mxu1 %v3520_v47  ;;  %v1499_v39 = vld [vmem:[#allocation10 + $0x360] sm:$0xff]  ;;  %v3575_v44 = vcombine.low %v1496_v40, %v1500_v42  ;;  %v1504_v47 = vld [vmem:[#allocation10 + $0x388] sm:$0xff] }
 0x199   :  { %v3574_v41 = vcombine.high %v1495_v38, %v1499_v39  ;;  %v3573_v43 = vcombine.low %v1495_v38, %v1499_v39  ;;  %v3584_v51 = vcombine.high %v1504_v47, %v1508_v49 }
 0x19b   :  { %2982 = vmatpush1.bf16.msra.mxu0 %v3517_v16  ;;  %3064 = vmatpush1.bf16.msra.mxu1 %v3519_v46  ;;  %v1503_v16 = vld [vmem:[#allocation10 + $0x380] sm:$0xff] }
 0x19c   :  { %2983 = vmatprep.subr.bf16.mxu0 %v3526_v50  ;;  %3065 = vmatprep.subr.bf16.mxu1 %v3528_v54  ;;  %v1507_v46 = vld [vmem:[#allocation10 + $0x3a0] sm:$0xff]  ;;  %v3583_v50 = vcombine.low %v1504_v47, %v1508_v49  ;;  %v1512_v54 = vld [vmem:[#allocation10 + $0x3c8] sm:$0xff] }
 0x19d   :  { %v3582_v48 = vcombine.high %v1503_v16, %v1507_v46  ;;  %v3581_v29 = vcombine.low %v1503_v16, %v1507_v46  ;;  %v3592_v59 = vcombine.high %v1512_v54, %v1516_v57 }
 0x19f   :  { %2984 = vmatpush1.bf16.msra.mxu0 %v3525_v52  ;;  %3066 = vmatpush1.bf16.msra.mxu1 %v3527_v53  ;;  %v1511_v52 = vld [vmem:[#allocation10 + $0x3c0] sm:$0xff] }
 0x1a0   :  { %2985 = vmatprep.subr.bf16.mxu0 %v3534_v58  ;;  %3067 = vmatprep.subr.bf16.mxu1 %v3536_v62  ;;  %v1515_v53 = vld [vmem:[#allocation10 + $0x3e0] sm:$0xff]  ;;  %v3591_v58 = vcombine.low %v1512_v54, %v1516_v57  ;;  %v4303_v62 = vld [vmem:[#allocation10 + $0x408] sm:$0xff] }
 0x1a1   :  { %v3589_v55 = vcombine.low %v1511_v52, %v1515_v53  ;;  %v3590_v56 = vcombine.high %v1511_v52, %v1515_v53  ;;  %v3600_v3 = vcombine.high %v4303_v62, %v4307_v0 }
 0x1a3   :  { %2986 = vmatpush1.bf16.msra.mxu0 %v3533_v60  ;;  %3068 = vmatpush1.bf16.msra.mxu1 %v3535_v61  ;;  %v4299_v60 = vld [vmem:[#allocation10 + $0x400] sm:$0xff] }
 0x1a4   :  { %2987 = vmatprep.subr.bf16.mxu0 %v3542_v2  ;;  %3069 = vmatprep.subr.bf16.mxu1 %v3544_v6  ;;  %v4301_v61 = vld [vmem:[#allocation10 + $0x420] sm:$0xff]  ;;  %v3599_v2 = vcombine.low %v4303_v62, %v4307_v0 }
 0x1a5   :  { %v3598_v63 = vcombine.high %v4299_v60, %v4301_v61  ;;  %v3597_v1 = vcombine.low %v4299_v60, %v4301_v61 }
 0x1a7   :  { %2988 = vmatpush1.bf16.msra.mxu0 %v3541_v4  ;;  %3070 = vmatpush1.bf16.msra.mxu1 %v3543_v5  ;;  %v396_v4 = vld [vmem:[#allocation8] sm:$0xf] }
 0x1a8   :  { %2989 = vmatprep.subr.bf16.mxu0 %v3550_v10  ;;  %3071 = vmatprep.subr.bf16.mxu1 %v3552_v18  ;;  %v401_v5 = vrot.slane %v396_v4, %v4272_v15  ;;  %v409_v6 = vrot.slane %v396_v4, %v4294_v32  ;;  %v405_v7 = vrot.slane %v396_v4, %v4280_v17  ;;  %v4151_v10 = vmov 0.0  }
 0x1a9   :  { %v413_v8 = vrot.slane %v396_v4, %v4285_v19  ;;  %v3468_v11 = vsel %vm1224_vm1, 1.0, %v4151_v10 }
 0x1ab   :  { %2990 = vmatpush1.bf16.msra.mxu0 %v3549_v12  ;;  %3072 = vmatpush1.bf16.msra.mxu1 %v3551_v13 }
 0x1ac   :  { %2991 = vmatprep.subr.bf16.mxu0 %v3558_v23  ;;  %3073 = vmatprep.subr.bf16.mxu1 %v3560_v27 }
 0x1af   :  { %2992 = vmatpush1.bf16.msra.mxu0 %v3557_v25  ;;  %3074 = vmatpush1.bf16.msra.mxu1 %v3559_v26 }
 0x1b0   :  { %2993 = vmatprep.subr.bf16.mxu0 %v3566_v33  ;;  %3075 = vmatprep.subr.bf16.mxu1 %v3568_v37 }
 0x1b3   :  { %2994 = vmatpush1.bf16.msra.mxu0 %v3565_v35  ;;  %3076 = vmatpush1.bf16.msra.mxu1 %v3567_v36 }
 0x1b4   :  { %2995 = vmatprep.subr.bf16.mxu0 %v3574_v41  ;;  %3077 = vmatprep.subr.bf16.mxu1 %v3576_v45 }
 0x1b7   :  { %2996 = vmatpush1.bf16.msra.mxu0 %v3573_v43  ;;  %3078 = vmatpush1.bf16.msra.mxu1 %v3575_v44 }
 0x1b8   :  { %2997 = vmatprep.subr.bf16.mxu0 %v3582_v48  ;;  %3079 = vmatprep.subr.bf16.mxu1 %v3584_v51 }
 0x1bb   :  { %2998 = vmatpush1.bf16.msra.mxu0 %v3581_v29  ;;  %3080 = vmatpush1.bf16.msra.mxu1 %v3583_v50 }
 0x1bc   :  { %2999 = vmatprep.subr.bf16.mxu0 %v3590_v56  ;;  %3081 = vmatprep.subr.bf16.mxu1 %v3592_v59 }
 0x1bf   :  { %3000 = vmatpush1.bf16.msra.mxu0 %v3589_v55  ;;  %3082 = vmatpush1.bf16.msra.mxu1 %v3591_v58 }
 0x1c0   :  { %3010 = vmatprep.subr.bf16.mxu0 %v3598_v63  ;;  %3092 = vmatprep.subr.bf16.mxu1 %v3600_v3 }
 0x255   :  { %v1133_v9 = vpop.f32.mrb[4].mxu0  ;;  %v1215_v12 = vpop.f32.mrb[4].mxu1 }
 0x256   :  { %v3725_v13 = vadd.f32 %v1133_v9, %v401_v5  ;;  %v3727_v18 = vadd.f32 %v1215_v12, %v409_v6  ;;  %v1135_v20 = vpop.f32.mrb[5].mxu0  ;;  %v1217_v21 = vpop.f32.mrb[5].mxu1 }
 0x257   :  { %v3726_v22 = vadd.f32 %v1135_v20, %v405_v7  ;;  %v3728_v23 = vadd.f32 %v1217_v21, %v413_v8  ;;  %v1137_v24 = vpop.f32.mrb[6].mxu0  ;;  %v1219_v25 = vpop.f32.mrb[6].mxu1 }
 0x258   :  { %v1227_v26 = vmul.f32 %v3725_v13, %v3468_v11  ;;  %v1229_v27 = vmul.f32 %v3727_v18, %v3468_v11  ;;  %v1138_v28 = vpop.f32.mrb[7].mxu0  ;;  %v1220_v30 = vpop.f32.mrb[7].mxu1 }
 0x259   :  { %v1228_v31 = vmul.f32 %v3726_v22, %v3468_v11  ;;  %v1230_v33 = vmul.f32 %v3728_v23, %v3468_v11 }
 0x25a   :  { %v1231_v34 = vrot.slane %v1227_v26, 4  ;;  %v1243_v35 = vrot.slane %v1229_v27, 4 }
 0x25b   :  { %v1237_v36 = vrot.slane %v1228_v31, 4  ;;  %v1249_v37 = vrot.slane %v1230_v33, 4 }
 0x25c   :  { %v1232_v38 = vadd.f32 %v1231_v34, %v1227_v26  ;;  %v1244_v39 = vadd.f32 %v1243_v35, %v1229_v27 }
 0x25d   :  { %v1238_v40 = vadd.f32 %v1237_v36, %v1228_v31  ;;  %v1250_v41 = vadd.f32 %v1249_v37, %v1230_v33 }
 0x25e   :  { %v1233_v42 = vrot.slane %v1232_v38, 2  ;;  %v1245_v43 = vrot.slane %v1244_v39, 2 }
 0x25f   :  { %v1239_v44 = vrot.slane %v1238_v40, 2  ;;  %v1251_v45 = vrot.slane %v1250_v41, 2 }
 0x260   :  { %v1234_v16 = vadd.f32 %v1233_v42, %v1232_v38  ;;  %v1246_v46 = vadd.f32 %v1245_v43, %v1244_v39 }
 0x261   :  { %v1240_v47 = vadd.f32 %v1239_v44, %v1238_v40  ;;  %v1252_v48 = vadd.f32 %v1251_v45, %v1250_v41 }
 0x262   :  { %v1235_v49 = vrot.slane %v1234_v16, 1  ;;  %v1247_v29 = vrot.slane %v1246_v46, 1 }
 0x263   :  { %v1241_v50 = vrot.slane %v1240_v47, 1  ;;  %v1253_v51 = vrot.slane %v1252_v48, 1 }
 0x264   :  { %v1236_v52 = vadd.f32 %v1235_v49, %v1234_v16  ;;  %v1248_v53 = vadd.f32 %v1247_v29, %v1246_v46 }
 0x265   :  { %v1242_v54 = vadd.f32 %v1241_v50, %v1240_v47  ;;  %v1254_v55 = vadd.f32 %v1253_v51, %v1252_v48  ;;  %v1307_v51 = vld [vmem:[%s4416_s5] sm:$0xf] }
 0x266   :  { %v1255_v56 = vmul.f32 0.5, %v1236_v52  ;;  %v1257_v57 = vmul.f32 0.5, %v1248_v53  ;;  %v1312_v52 = vrot.slane %v1307_v51, %v4272_v15  ;;  %v1320_v53 = vrot.slane %v1307_v51, %v4294_v32 }
 0x267   :  { %v1256_v58 = vmul.f32 0.5, %v1242_v54  ;;  %v1258_v59 = vmul.f32 0.5, %v1254_v55  ;;  %v1316_v54 = vrot.slane %v1307_v51, %v4280_v17 }
 0x268   :  { %v4320_v63 = vsub.f32 %v3725_v13, %v1255_v56  ;;  %v4322_v3 = vsub.f32 %v3727_v18, %v1257_v57  ;;  %v1353_v56 = vld [vmem:[%s4417_s6] sm:$0xf]  ;;  %v1324_v57 = vrot.slane %v1307_v51, %v4285_v19  ;;  %v1543_v51 = vld [vmem:[#allocation10 + $0x4c0] sm:$0xff] }
 0x269   :  { %v4324_v4 = vsub.f32 %v3726_v22, %v1256_v58  ;;  %v4326_v5 = vsub.f32 %v3728_v23, %v1258_v59 }
 0x26a   :  { %v1263_v6 = vmul.f32 %v3468_v11, %v4320_v63  ;;  %v1265_v7 = vmul.f32 %v3468_v11, %v4322_v3 }
 0x26b   :  { %v1264_v8 = vmul.f32 %v3468_v11, %v4324_v4  ;;  %v1266_v9 = vmul.f32 %v3468_v11, %v4326_v5 }
 0x26c   :  { %v1267_v10 = vmul.f32 %v1263_v6, %v1263_v6  ;;  %v1269_v12 = vmul.f32 %v1265_v7, %v1265_v7 }
 0x26d   :  { %v1268_v20 = vmul.f32 %v1264_v8, %v1264_v8  ;;  %v1270_v21 = vmul.f32 %v1266_v9, %v1266_v9 }
 0x26e   :  { %v1271_v13 = vrot.slane %v1267_v10, 4  ;;  %v1283_v24 = vrot.slane %v1269_v12, 4 }
 0x26f   :  { %v1277_v18 = vrot.slane %v1268_v20, 4  ;;  %v1289_v25 = vrot.slane %v1270_v21, 4 }
 0x270   :  { %v1272_v22 = vadd.f32 %v1271_v13, %v1267_v10  ;;  %v1284_v26 = vadd.f32 %v1283_v24, %v1269_v12  ;;  %v1358_v10 = vrot.slane %v1353_v56, %v4272_v15 }
 0x271   :  { %v1278_v23 = vadd.f32 %v1277_v18, %v1268_v20  ;;  %v1290_v27 = vadd.f32 %v1289_v25, %v1270_v21  ;;  %v1366_v21 = vrot.slane %v1353_v56, %v4294_v32  ;;  %v1362_v25 = vrot.slane %v1353_v56, %v4280_v17 }
 0x272   :  { %v1273_v28 = vrot.slane %v1272_v22, 2  ;;  %v1285_v30 = vrot.slane %v1284_v26, 2 }
 0x273   :  { %v1279_v31 = vrot.slane %v1278_v23, 2  ;;  %v1291_v33 = vrot.slane %v1290_v27, 2 }
 0x274   :  { %v1274_v34 = vadd.f32 %v1273_v28, %v1272_v22  ;;  %v1286_v35 = vadd.f32 %v1285_v30, %v1284_v26 }
 0x275   :  { %v1280_v36 = vadd.f32 %v1279_v31, %v1278_v23  ;;  %v1292_v11 = vadd.f32 %v1291_v33, %v1290_v27  ;;  %v1370_v23 = vrot.slane %v1353_v56, %v4285_v19  ;;  %v1556_v56 = vld [vmem:[#allocation10 + $0x528] sm:$0xff] }
 0x276   :  { %v1275_v37 = vrot.slane %v1274_v34, 1  ;;  %v1287_v38 = vrot.slane %v1286_v35, 1 }
 0x277   :  { %v1281_v39 = vrot.slane %v1280_v36, 1  ;;  %v1293_v40 = vrot.slane %v1292_v11, 1 }
 0x278   :  { %v1276_v41 = vadd.f32 %v1275_v37, %v1274_v34  ;;  %v1288_v42 = vadd.f32 %v1287_v38, %v1286_v35  ;;  %v1527_v38 = vld [vmem:[#allocation10 + $0x440] sm:$0xff] }
 0x279   :  { %v1282_v43 = vadd.f32 %v1281_v39, %v1280_v36  ;;  %v1294_v44 = vadd.f32 %v1293_v40, %v1292_v11  ;;  %v1531_v39 = vld [vmem:[#allocation10 + $0x460] sm:$0xff]  ;;  %v1528_v40 = vld [vmem:[#allocation10 + $0x448] sm:$0xff] }
 0x27a   :  { %v1295_v45 = vmul.f32 0.5, %v1276_v41  ;;  %v1297_v16 = vmul.f32 0.5, %v1288_v42  ;;  %v1532_v41 = vld [vmem:[#allocation10 + $0x468] sm:$0xff] }
 0x27b   :  { %v1296_v46 = vmul.f32 0.5, %v1282_v43  ;;  %v1298_v47 = vmul.f32 0.5, %v1294_v44  ;;  %v3608_v44 = vcombine.high %v1528_v40, %v1532_v41 }
 0x27c   :  { %v1299_v48 = vadd.f32 1e-05, %v1295_v45  ;;  %v1301_v49 = vadd.f32 1e-05, %v1297_v16  ;;  %v1539_v45 = vld [vmem:[#allocation10 + $0x4a0] sm:$0xff]  ;;  %v1536_v16 = vld [vmem:[#allocation10 + $0x488] sm:$0xff] }
 0x27d   :  { %v1300_v29 = vadd.f32 1e-05, %v1296_v46  ;;  %v1302_v50 = vadd.f32 1e-05, %v1298_v47  ;;  %v1540_v46 = vld [vmem:[#allocation10 + $0x4a8] sm:$0xff] }
 0x27e   :  { %3977 = vrsqrt.f32 %v1299_v48  ;;  %v3605_v48 = vcombine.low %v1527_v38, %v1531_v39  ;;  %v3615_v61 = vcombine.low %v1536_v16, %v1540_v46 }
 0x27f   :  { %3979 = vrsqrt.f32 %v1301_v49  ;;  %v3607_v49 = vcombine.low %v1528_v40, %v1532_v41  ;;  %v1588_v40 = vld [vmem:[#allocation10 + $0x628] sm:$0xff] }
 0x280   :  { %3981 = vrsqrt.f32 %v1300_v29 }
 0x281   :  { %3983 = vrsqrt.f32 %v1302_v50  ;;  %v3616_v50 = vcombine.high %v1536_v16, %v1540_v46  ;;  %v1595_v16 = vld [vmem:[#allocation10 + $0x660] sm:$0xff]  ;;  %v1592_v46 = vld [vmem:[#allocation10 + $0x648] sm:$0xff] }
 0x288   :  { %v3978_v55 = vpop.eup %3977 }
 0x289   :  { %v3980_v58 = vpop.eup %3979  ;;  %v1329_v59 = vmul.f32 %v3978_v55, %v1312_v52  ;;  %v1547_v52 = vld [vmem:[#allocation10 + $0x4e0] sm:$0xff]  ;;  %v1552_v55 = vld [vmem:[#allocation10 + $0x508] sm:$0xff] }
 0x28a   :  { %v3982_v6 = vpop.eup %3981  ;;  %v1331_v7 = vmul.f32 %v3980_v58, %v1320_v53  ;;  %v1544_v53 = vld [vmem:[#allocation10 + $0x4c8] sm:$0xff]  ;;  %v3622_v62 = vcombine.high %v1543_v51, %v1547_v52 }
 0x28b   :  { %v3984_v8 = vpop.eup %3983  ;;  %v1336_v9 = vrot.slane %v1329_v59, %v4272_v15  ;;  %v1330_v12 = vmul.f32 %v3982_v6, %v1316_v54  ;;  %v1548_v54 = vld [vmem:[#allocation10 + $0x4e8] sm:$0xff]  ;;  %v3632_v6 = vcombine.high %v1552_v55, %v1556_v56 }
 0x28c   :  { %v1344_v20 = vrot.slane %v1331_v7, %v4272_v15  ;;  %v1332_v13 = vmul.f32 %v3984_v8, %v1324_v57  ;;  %v3624_v0 = vcombine.high %v1544_v53, %v1548_v54  ;;  %v3621_v57 = vcombine.low %v1543_v51, %v1547_v52  ;;  %v1559_v7 = vld [vmem:[#allocation10 + $0x540] sm:$0xff] }
 0x28d   :  { %v1349_v24 = vmul.f32 %v1336_v9, %v4320_v63  ;;  %v1340_v18 = vrot.slane %v1330_v12, %v4272_v15  ;;  %v3623_v58 = vcombine.low %v1544_v53, %v1548_v54  ;;  %v1563_v8 = vld [vmem:[#allocation10 + $0x560] sm:$0xff]  ;;  %v1560_v9 = vld [vmem:[#allocation10 + $0x548] sm:$0xff] }
 0x28e   :  { %v1351_v22 = vmul.f32 %v1344_v20, %v4322_v3  ;;  %v1348_v26 = vrot.slane %v1332_v13, %v4272_v15  ;;  %v3631_v20 = vcombine.low %v1552_v55, %v1556_v56  ;;  %v1599_v52 = vld [vmem:[#allocation10 + $0x680] sm:$0xff]  ;;  %v1600_v54 = vld [vmem:[#allocation10 + $0x688] sm:$0xff] }
 0x28f   :  { %v1375_v27 = vadd.f32 %v1358_v10, %v1349_v24  ;;  %v1350_v28 = vmul.f32 %v1340_v18, %v4324_v4  ;;  %v1535_v4 = vld [vmem:[#allocation10 + $0x480] sm:$0xff]  ;;  %v1564_v10 = vld [vmem:[#allocation10 + $0x568] sm:$0xff] }
 0x290   :  { %v4353_v30 = vadd.f32 %v1366_v21, %v1351_v22  ;;  %v1352_v31 = vmul.f32 %v1348_v26, %v4326_v5  ;;  %v3606_v5 = vcombine.high %v1527_v38, %v1531_v39  ;;  %v3614_v29 = vcombine.high %v1535_v4, %v1539_v45  ;;  %v1567_v24 = vld [vmem:[#allocation10 + $0x580] sm:$0xff]  ;;  %v1572_v22 = vld [vmem:[#allocation10 + $0x5a8] sm:$0xff] }
 0x291   :  { %v1379_v33 = vmul.f32 0.2, %v1375_v27  ;;  %v1376_v34 = vadd.f32 %v1362_v25, %v1350_v28  ;;  %v3613_v60 = vcombine.low %v1535_v4, %v1539_v45  ;;  %v3638_v21 = vcombine.high %v1559_v7, %v1563_v8  ;;  %v1571_v18 = vld [vmem:[#allocation10 + $0x5a0] sm:$0xff]  ;;  %v1568_v25 = vld [vmem:[#allocation10 + $0x588] sm:$0xff] }
 0x292   :  { %v1378_v63 = vadd.f32 %v1370_v23, %v1352_v31  ;;  %v3640_v13 = vcombine.high %v1560_v9, %v1564_v10  ;;  %v3637_v26 = vcombine.low %v1559_v7, %v1563_v8  ;;  %v3639_v23 = vcombine.low %v1560_v9, %v1564_v10  ;;  %v1575_v31 = vld [vmem:[#allocation10 + $0x5c0] sm:$0xff]  ;;  %v1584_v39 = vld [vmem:[#allocation10 + $0x608] sm:$0xff] }
 0x293   :  { %v1380_v35 = vmul.f32 0.2, %v1376_v34  ;;  %v1383_v11 = vmax.f32 %v1375_v27, %v1379_v33  ;;  %v3646_v27 = vcombine.high %v1567_v24, %v1571_v18  ;;  %v3648_v28 = vcombine.high %v1568_v25, %v1572_v22  ;;  %v1579_v33 = vld [vmem:[#allocation10 + $0x5e0] sm:$0xff]  ;;  %v1608_v56 = vld [vmem:[#allocation10 + $0x6c8] sm:$0xff] }
 0x294   :  { %v1382_v36 = vmul.f32 0.2, %v1378_v63  ;;  %v1583_v38 = vld [vmem:[#allocation10 + $0x600] sm:$0xff]  ;;  %v3653_v41 = vcombine.low %v1575_v31, %v1579_v33  ;;  %v1616_v10 = vld [vmem:[#allocation10 + $0x708] sm:$0xff] }
 0x295   :  { %v1384_v37 = vmax.f32 %v1376_v34, %v1380_v35  ;;  %v4358_v43 = vpack.c.bf16 %v1383_v11, %v1383_v11  ;;  %v1576_v34 = vld [vmem:[#allocation10 + $0x5c8] sm:$0xff]  ;;  %v3645_v35 = vcombine.low %v1567_v24, %v1571_v18  ;;  %v3654_v11 = vcombine.high %v1575_v31, %v1579_v33  ;;  %v1591_v45 = vld [vmem:[#allocation10 + $0x640] sm:$0xff] }
 0x296   :  { %v1386_v3 = vmax.f32 %v1378_v63, %v1382_v36  ;;  %v1580_v63 = vld [vmem:[#allocation10 + $0x5e8] sm:$0xff]  ;;  %v3647_v36 = vcombine.low %v1568_v25, %v1572_v22  ;;  %v1603_v53 = vld [vmem:[#allocation10 + $0x6a0] sm:$0xff] }
 0x297   :  { %v4356_v42 = vpack.c.bf16 %v1384_v37, %v1384_v37  ;;  %v3656_v37 = vcombine.high %v1576_v34, %v1580_v63  ;;  %v3655_v4 = vcombine.low %v1576_v34, %v1580_v63  ;;  %v1611_v55 = vld [vmem:[#allocation10 + $0x6e0] sm:$0xff]  ;;  %v1624_v22 = vld [vmem:[#allocation10 + $0x748] sm:$0xff] }
 0x298   :  { %v4364_v47 = vpack.c.bf16 %v1386_v3, %v1386_v3  ;;  %v1587_v3 = vld [vmem:[#allocation10 + $0x620] sm:$0xff]  ;;  %v1632_v63 = vld [vmem:[#allocation10 + $0x788] sm:$0xff] }
 0x299   :  { %3001 = vmatprep.mubr.bf16.mxu0 %v4356_v42  ;;  %3083 = vmatprep.mubr.bf16.mxu1 %v4356_v42  ;;  %v1615_v8 = vld [vmem:[#allocation10 + $0x700] sm:$0xff] }
 0x29a   :  { %3002 = vmatmul.mubr.bf16.vlgmr.msra.gmra.mrb[8].mxu0 %v4358_v43  ;;  %3084 = vmatmul.mubr.bf16.vlgmr.msra.gmra.mrb[8].mxu1 %v4358_v43  ;;  %v1619_v9 = vld [vmem:[#allocation10 + $0x720] sm:$0xff] }
 0x29b   :  { %3011 = vmatpush1.bf16.msra.mxu0 %v3597_v1  ;;  %3093 = vmatpush1.bf16.msra.mxu1 %v3599_v2  ;;  %v1551_v1 = vld [vmem:[#allocation10 + $0x500] sm:$0xff] }
 0x29c   :  { %3042 = vmatprep.mubr.bf16.mxu0 %v4364_v47  ;;  %3124 = vmatprep.mubr.bf16.mxu1 %v4364_v47  ;;  %v1555_v2 = vld [vmem:[#allocation10 + $0x520] sm:$0xff] }
 0x29d   :  { %3012 = vmatprep.subr.bf16.mxu0 %v3606_v5  ;;  %3094 = vmatprep.subr.bf16.mxu1 %v3608_v44  ;;  %v3630_v59 = vcombine.high %v1551_v1, %v1555_v2  ;;  %v3629_v12 = vcombine.low %v1551_v1, %v1555_v2  ;;  %v3662_v5 = vcombine.high %v1583_v38, %v1587_v3  ;;  %v1607_v2 = vld [vmem:[#allocation10 + $0x6c0] sm:$0xff] }
 0x29e   :  { %v3664_v44 = vcombine.high %v1584_v39, %v1588_v40  ;;  %v1623_v18 = vld [vmem:[#allocation10 + $0x740] sm:$0xff] }
 0x29f   :  { %3013 = vmatpush1.bf16.msra.mxu0 %v3605_v48  ;;  %3095 = vmatpush1.bf16.msra.mxu1 %v3607_v49  ;;  %v1596_v48 = vld [vmem:[#allocation10 + $0x668] sm:$0xff]  ;;  %v3661_v49 = vcombine.low %v1583_v38, %v1587_v3  ;;  %v1627_v25 = vld [vmem:[#allocation10 + $0x760] sm:$0xff] }
 0x2a0   :  { %3014 = vmatprep.subr.bf16.mxu0 %v3614_v29  ;;  %3096 = vmatprep.subr.bf16.mxu1 %v3616_v50  ;;  %v3663_v29 = vcombine.low %v1584_v39, %v1588_v40  ;;  %v3670_v50 = vcombine.high %v1591_v45, %v1595_v16  ;;  %v3672_v51 = vcombine.high %v1592_v46, %v1596_v48  ;;  %v1631_v33 = vld [vmem:[#allocation10 + $0x780] sm:$0xff]  ;;  %v1640_v40 = vld [vmem:[#allocation10 + $0x7c8] sm:$0xff] }
 0x2a1   :  { %v1635_v34 = vld [vmem:[#allocation10 + $0x7a0] sm:$0xff] }
 0x2a2   :  { %v1639_v3 = vld [vmem:[#allocation10 + $0x7c0] sm:$0xff] }
 0x2a3   :  { %3015 = vmatpush1.bf16.msra.mxu0 %v3613_v60  ;;  %3097 = vmatpush1.bf16.msra.mxu1 %v3615_v61  ;;  %v1604_v60 = vld [vmem:[#allocation10 + $0x6a8] sm:$0xff]  ;;  %v3669_v61 = vcombine.low %v1591_v45, %v1595_v16  ;;  %v1643_v39 = vld [vmem:[#allocation10 + $0x7e0] sm:$0xff] }
 0x2a4   :  { %3016 = vmatprep.subr.bf16.mxu0 %v3622_v62  ;;  %3098 = vmatprep.subr.bf16.mxu1 %v3624_v0  ;;  %v3671_v62 = vcombine.low %v1592_v46, %v1596_v48  ;;  %v3678_v0 = vcombine.high %v1599_v52, %v1603_v53  ;;  %v3680_v1 = vcombine.high %v1600_v54, %v1604_v60  ;;  %v1393_v46 = vld [vmem:[#allocation10 + $0x10] sm:$0xff] }
 0x2a5   :  { %v3718_v45 = vcombine.high %v1639_v3, %v1643_v39  ;;  %v1397_v48 = vld [vmem:[#allocation10 + $0x30] sm:$0xff] }
 0x2a7   :  { %3017 = vmatpush1.bf16.msra.mxu0 %v3621_v57  ;;  %3099 = vmatpush1.bf16.msra.mxu1 %v3623_v58  ;;  %v1612_v57 = vld [vmem:[#allocation10 + $0x6e8] sm:$0xff]  ;;  %v3677_v58 = vcombine.low %v1599_v52, %v1603_v53  ;;  %v3474_v53 = vcombine.high %v1393_v46, %v1397_v48 }
 0x2a8   :  { %3018 = vmatprep.subr.bf16.mxu0 %v3630_v59  ;;  %3100 = vmatprep.subr.bf16.mxu1 %v3632_v6  ;;  %v3679_v59 = vcombine.low %v1600_v54, %v1604_v60  ;;  %v3686_v6 = vcombine.high %v1607_v2, %v1611_v55  ;;  %v3688_v7 = vcombine.high %v1608_v56, %v1612_v57  ;;  %v1401_v60 = vld [vmem:[#allocation10 + $0x50] sm:$0xff] }
 0x2ab   :  { %3019 = vmatpush1.bf16.msra.mxu0 %v3629_v12  ;;  %3101 = vmatpush1.bf16.msra.mxu1 %v3631_v20  ;;  %v1620_v12 = vld [vmem:[#allocation10 + $0x728] sm:$0xff]  ;;  %v3685_v20 = vcombine.low %v1607_v2, %v1611_v55 }
 0x2ac   :  { %3020 = vmatprep.subr.bf16.mxu0 %v3638_v21  ;;  %3102 = vmatprep.subr.bf16.mxu1 %v3640_v13  ;;  %v3687_v21 = vcombine.low %v1608_v56, %v1612_v57  ;;  %v3694_v13 = vcombine.high %v1615_v8, %v1619_v9  ;;  %v3696_v24 = vcombine.high %v1616_v10, %v1620_v12 }
 0x2af   :  { %3021 = vmatpush1.bf16.msra.mxu0 %v3637_v26  ;;  %3103 = vmatpush1.bf16.msra.mxu1 %v3639_v23  ;;  %v1628_v26 = vld [vmem:[#allocation10 + $0x768] sm:$0xff]  ;;  %v3693_v23 = vcombine.low %v1615_v8, %v1619_v9 }
 0x2b0   :  { %3022 = vmatprep.subr.bf16.mxu0 %v3646_v27  ;;  %3104 = vmatprep.subr.bf16.mxu1 %v3648_v28  ;;  %v3695_v27 = vcombine.low %v1616_v10, %v1620_v12  ;;  %v3702_v28 = vcombine.high %v1623_v18, %v1627_v25  ;;  %v3704_v31 = vcombine.high %v1624_v22, %v1628_v26  ;;  %v1417_v12 = vld [vmem:[#allocation10 + $0xd0] sm:$0xff] }
 0x2b3   :  { %3023 = vmatpush1.bf16.msra.mxu0 %v3645_v35  ;;  %3105 = vmatpush1.bf16.msra.mxu1 %v3647_v36  ;;  %v1636_v35 = vld [vmem:[#allocation10 + $0x7a8] sm:$0xff]  ;;  %v3701_v36 = vcombine.low %v1623_v18, %v1627_v25 }
 0x2b4   :  { %3024 = vmatprep.subr.bf16.mxu0 %v3654_v11  ;;  %3106 = vmatprep.subr.bf16.mxu1 %v3656_v37  ;;  %v3703_v11 = vcombine.low %v1624_v22, %v1628_v26  ;;  %v3710_v37 = vcombine.high %v1631_v33, %v1635_v34  ;;  %v3712_v38 = vcombine.high %v1632_v63, %v1636_v35  ;;  %v1425_v26 = vld [vmem:[#allocation10 + $0x110] sm:$0xff] }
 0x2b7   :  { %3025 = vmatpush1.bf16.msra.mxu0 %v3653_v41  ;;  %3107 = vmatpush1.bf16.msra.mxu1 %v3655_v4  ;;  %v1644_v41 = vld [vmem:[#allocation10 + $0x7e8] sm:$0xff]  ;;  %v3709_v4 = vcombine.low %v1631_v33, %v1635_v34 }
 0x2b8   :  { %3026 = vmatprep.subr.bf16.mxu0 %v3662_v5  ;;  %3108 = vmatprep.subr.bf16.mxu1 %v3664_v44  ;;  %v3711_v5 = vcombine.low %v1632_v63, %v1636_v35  ;;  %v1381_v44 = vmul.f32 0.2, %v4353_v30  ;;  %v3720_v16 = vcombine.high %v1640_v40, %v1644_v41  ;;  %v1433_v63 = vld [vmem:[#allocation10 + $0x150] sm:$0xff] }
 0x2b9   :  { %v1437_v35 = vld [vmem:[#allocation10 + $0x170] sm:$0xff] }
 0x2ba   :  { %v1385_v52 = vmax.f32 %v4353_v30, %v1381_v44  ;;  %v1410_v30 = vld [vmem:[#allocation10 + $0x98] sm:$0xff]  ;;  %v3513_v44 = vcombine.low %v1433_v63, %v1437_v35 }
 0x2bb   :  { %3027 = vmatpush1.bf16.msra.mxu0 %v3661_v49  ;;  %3109 = vmatpush1.bf16.msra.mxu1 %v3663_v29  ;;  %v1394_v49 = vld [vmem:[#allocation10 + $0x18] sm:$0xff] }
 0x2bc   :  { %3028 = vmatprep.subr.bf16.mxu0 %v3670_v50  ;;  %3110 = vmatprep.subr.bf16.mxu1 %v3672_v51  ;;  %v1398_v29 = vld [vmem:[#allocation10 + $0x38] sm:$0xff]  ;;  %v3717_v50 = vcombine.low %v1639_v3, %v1643_v39  ;;  %v3719_v51 = vcombine.low %v1640_v40, %v1644_v41  ;;  %v4376_v2 = vpack.c.bf16 %v1385_v52, %v1385_v52  ;;  %v1441_v40 = vld [vmem:[#allocation10 + $0x190] sm:$0xff] }
 0x2bd   :  { %v3476_v54 = vcombine.high %v1394_v49, %v1398_v29  ;;  %v3475_v55 = vcombine.low %v1394_v49, %v1398_v29  ;;  %v3514_v3 = vcombine.high %v1433_v63, %v1437_v35  ;;  %v1445_v41 = vld [vmem:[#allocation10 + $0x1b0] sm:$0xff]  ;;  %v1450_v29 = vld [vmem:[#allocation10 + $0x1d8] sm:$0xff] }
 0x2be   :  { %v1453_v49 = vld [vmem:[#allocation10 + $0x1f0] sm:$0xff] }
 0x2bf   :  { %3029 = vmatpush1.bf16.msra.mxu0 %v3669_v61  ;;  %3111 = vmatpush1.bf16.msra.mxu1 %v3671_v62  ;;  %v1405_v61 = vld [vmem:[#allocation10 + $0x70] sm:$0xff]  ;;  %v1402_v62 = vld [vmem:[#allocation10 + $0x58] sm:$0xff] }
 0x2c0   :  { %3030 = vmatprep.subr.bf16.mxu0 %v3678_v0  ;;  %3112 = vmatprep.subr.bf16.mxu1 %v3680_v1  ;;  %v1406_v0 = vld [vmem:[#allocation10 + $0x78] sm:$0xff]  ;;  %v3473_v1 = vcombine.low %v1393_v46, %v1397_v48  ;;  %v3482_v56 = vcombine.high %v1401_v60, %v1405_v61  ;;  %v1449_v48 = vld [vmem:[#allocation10 + $0x1d0] sm:$0xff] }
 0x2c1   :  { %v3484_v57 = vcombine.high %v1402_v62, %v1406_v0  ;;  %v3483_v8 = vcombine.low %v1402_v62, %v1406_v0  ;;  %v1458_v62 = vld [vmem:[#allocation10 + $0x218] sm:$0xff]  ;;  %v1489_v63 = vld [vmem:[#allocation10 + $0x310] sm:$0xff] }
 0x2c2   :  { %v1462_v0 = vld [vmem:[#allocation10 + $0x238] sm:$0xff]  ;;  %v1493_v35 = vld [vmem:[#allocation10 + $0x330] sm:$0xff] }
 0x2c3   :  { %3031 = vmatpush1.bf16.msra.mxu0 %v3677_v58  ;;  %3113 = vmatpush1.bf16.msra.mxu1 %v3679_v59  ;;  %v1409_v58 = vld [vmem:[#allocation10 + $0x90] sm:$0xff] }
 0x2c4   :  { %3032 = vmatprep.subr.bf16.mxu0 %v3686_v6  ;;  %3114 = vmatprep.subr.bf16.mxu1 %v3688_v7  ;;  %v1413_v59 = vld [vmem:[#allocation10 + $0xb0] sm:$0xff]  ;;  %v1414_v6 = vld [vmem:[#allocation10 + $0xb8] sm:$0xff]  ;;  %v3481_v7 = vcombine.low %v1401_v60, %v1405_v61 }
 0x2c5   :  { %v3490_v9 = vcombine.high %v1409_v58, %v1413_v59  ;;  %v3492_v10 = vcombine.high %v1410_v30, %v1414_v6  ;;  %v3491_v18 = vcombine.low %v1410_v30, %v1414_v6  ;;  %v1457_v60 = vld [vmem:[#allocation10 + $0x210] sm:$0xff]  ;;  %v1466_v30 = vld [vmem:[#allocation10 + $0x258] sm:$0xff] }
 0x2c6   :  { %v1461_v61 = vld [vmem:[#allocation10 + $0x230] sm:$0xff]  ;;  %v1470_v6 = vld [vmem:[#allocation10 + $0x278] sm:$0xff] }
 0x2c7   :  { %3033 = vmatpush1.bf16.msra.mxu0 %v3685_v20  ;;  %3115 = vmatpush1.bf16.msra.mxu1 %v3687_v21  ;;  %v1421_v20 = vld [vmem:[#allocation10 + $0xf0] sm:$0xff]  ;;  %v1418_v21 = vld [vmem:[#allocation10 + $0xd8] sm:$0xff] }
 0x2c8   :  { %3034 = vmatprep.subr.bf16.mxu0 %v3694_v13  ;;  %3116 = vmatprep.subr.bf16.mxu1 %v3696_v24  ;;  %v1422_v13 = vld [vmem:[#allocation10 + $0xf8] sm:$0xff]  ;;  %v3489_v24 = vcombine.low %v1409_v58, %v1413_v59  ;;  %v3498_v25 = vcombine.high %v1417_v12, %v1421_v20  ;;  %v1465_v58 = vld [vmem:[#allocation10 + $0x250] sm:$0xff] }
 0x2c9   :  { %v3500_v22 = vcombine.high %v1418_v21, %v1422_v13  ;;  %v1469_v59 = vld [vmem:[#allocation10 + $0x270] sm:$0xff] }
 0x2cb   :  { %3035 = vmatpush1.bf16.msra.mxu0 %v3693_v23  ;;  %3117 = vmatpush1.bf16.msra.mxu1 %v3695_v27  ;;  %v1429_v23 = vld [vmem:[#allocation10 + $0x130] sm:$0xff]  ;;  %v1430_v27 = vld [vmem:[#allocation10 + $0x138] sm:$0xff] }
 0x2cc   :  { %3036 = vmatprep.subr.bf16.mxu0 %v3702_v28  ;;  %3118 = vmatprep.subr.bf16.mxu1 %v3704_v31  ;;  %v3497_v28 = vcombine.low %v1417_v12, %v1421_v20  ;;  %v3499_v31 = vcombine.low %v1418_v21, %v1422_v13  ;;  %v3506_v33 = vcombine.high %v1425_v26, %v1429_v23  ;;  %v1473_v12 = vld [vmem:[#allocation10 + $0x290] sm:$0xff]  ;;  %v1474_v21 = vld [vmem:[#allocation10 + $0x298] sm:$0xff] }
 0x2cd   :  { %v1477_v20 = vld [vmem:[#allocation10 + $0x2b0] sm:$0xff]  ;;  %v1478_v13 = vld [vmem:[#allocation10 + $0x2b8] sm:$0xff] }
 0x2cf   :  { %3037 = vmatpush1.bf16.msra.mxu0 %v3701_v36  ;;  %3119 = vmatpush1.bf16.msra.mxu1 %v3703_v11  ;;  %v1434_v36 = vld [vmem:[#allocation10 + $0x158] sm:$0xff] }
 0x2d0   :  { %3038 = vmatprep.subr.bf16.mxu0 %v3710_v37  ;;  %3120 = vmatprep.subr.bf16.mxu1 %v3712_v38  ;;  %v1438_v11 = vld [vmem:[#allocation10 + $0x178] sm:$0xff]  ;;  %v3505_v37 = vcombine.low %v1425_v26, %v1429_v23  ;;  %v1481_v26 = vld [vmem:[#allocation10 + $0x2d0] sm:$0xff] }
 0x2d1   :  { %v3516_v39 = vcombine.high %v1434_v36, %v1438_v11  ;;  %v1485_v23 = vld [vmem:[#allocation10 + $0x2f0] sm:$0xff] }
 0x2d3   :  { %3039 = vmatpush1.bf16.msra.mxu0 %v3709_v4  ;;  %3121 = vmatpush1.bf16.msra.mxu1 %v3711_v5  ;;  %v1442_v4 = vld [vmem:[#allocation10 + $0x198] sm:$0xff] }
 0x2d4   :  { %3040 = vmatprep.subr.bf16.mxu0 %v3718_v45  ;;  %3122 = vmatprep.subr.bf16.mxu1 %v3720_v16  ;;  %v1446_v5 = vld [vmem:[#allocation10 + $0x1b8] sm:$0xff]  ;;  %v3515_v45 = vcombine.low %v1434_v36, %v1438_v11  ;;  %v3522_v16 = vcombine.high %v1441_v40, %v1445_v41 }
 0x2d5   :  { %v3524_v46 = vcombine.high %v1442_v4, %v1446_v5  ;;  %v3523_v52 = vcombine.low %v1442_v4, %v1446_v5  ;;  %v1490_v36 = vld [vmem:[#allocation10 + $0x318] sm:$0xff] }
 0x2d6   :  { %v1494_v11 = vld [vmem:[#allocation10 + $0x338] sm:$0xff] }
 0x2d7   :  { %3041 = vmatpush1.bf16.msra.mxu0 %v3717_v50  ;;  %3123 = vmatpush1.bf16.msra.mxu1 %v3719_v51  ;;  %v1454_v50 = vld [vmem:[#allocation10 + $0x1f8] sm:$0xff]  ;;  %v3521_v51 = vcombine.low %v1441_v40, %v1445_v41  ;;  %v1497_v40 = vld [vmem:[#allocation10 + $0x350] sm:$0xff] }
 0x2d8   :  { %3133 = vmatprep.subr.bf16.mxu0 %v3474_v53  ;;  %3215 = vmatprep.subr.bf16.mxu1 %v3476_v54  ;;  %v3530_v53 = vcombine.high %v1449_v48, %v1453_v49  ;;  %v3532_v54 = vcombine.high %v1450_v29, %v1454_v50  ;;  %v1501_v41 = vld [vmem:[#allocation10 + $0x370] sm:$0xff]  ;;  %v1498_v4 = vld [vmem:[#allocation10 + $0x358] sm:$0xff] }
 0x2d9   :  { %v1502_v5 = vld [vmem:[#allocation10 + $0x378] sm:$0xff] }
 0x2da   :  { %3043 = vmatmul.mubr.bf16.vlgmr.msra.gmra.mrb[8].mxu0 %v4376_v2  ;;  %3125 = vmatmul.mubr.bf16.vlgmr.msra.gmra.mrb[8].mxu1 %v4376_v2 }
 0x2db   :  { %3134 = vmatpush1.bf16.msra.mxu0 %v3473_v1  ;;  %3165 = vmatprep.mubr.bf16.mxu0 %v4356_v42  ;;  %v3529_v1 = vcombine.low %v1449_v48, %v1453_v49  ;;  %v1505_v48 = vld [vmem:[#allocation10 + $0x390] sm:$0xff] }
 0x2dc   :  { %3216 = vmatpush1.bf16.msra.mxu1 %v3475_v55  ;;  %3247 = vmatprep.mubr.bf16.mxu1 %v4356_v42  ;;  %v1426_v42 = vld [vmem:[#allocation10 + $0x118] sm:$0xff]  ;;  %v3531_v55 = vcombine.low %v1450_v29, %v1454_v50  ;;  %v1509_v49 = vld [vmem:[#allocation10 + $0x3b0] sm:$0xff] }
 0x2dd   :  { %3135 = vmatprep.subr.bf16.mxu0 %v3482_v56  ;;  %3217 = vmatprep.subr.bf16.mxu1 %v3484_v57  ;;  %v3508_v34 = vcombine.high %v1426_v42, %v1430_v27  ;;  %v3507_v38 = vcombine.low %v1426_v42, %v1430_v27  ;;  %v3538_v56 = vcombine.high %v1457_v60, %v1461_v61  ;;  %v1482_v42 = vld [vmem:[#allocation10 + $0x2d8] sm:$0xff] }
 0x2de   :  { %v3540_v57 = vcombine.high %v1458_v62, %v1462_v0  ;;  %v1486_v27 = vld [vmem:[#allocation10 + $0x2f8] sm:$0xff] }
 0x2df   :  { %3136 = vmatpush1.bf16.msra.mxu0 %v3481_v7  ;;  %v3537_v7 = vcombine.low %v1457_v60, %v1461_v61  ;;  %v1506_v29 = vld [vmem:[#allocation10 + $0x398] sm:$0xff]  ;;  %v1513_v60 = vld [vmem:[#allocation10 + $0x3d0] sm:$0xff] }
 0x2e0   :  { %3218 = vmatpush1.bf16.msra.mxu1 %v3483_v8  ;;  %3137 = vmatprep.subr.bf16.mxu0 %v3490_v9  ;;  %v3539_v8 = vcombine.low %v1458_v62, %v1462_v0  ;;  %v3546_v9 = vcombine.high %v1465_v58, %v1469_v59  ;;  %v1510_v50 = vld [vmem:[#allocation10 + $0x3b8] sm:$0xff]  ;;  %v1517_v61 = vld [vmem:[#allocation10 + $0x3f0] sm:$0xff] }
 0x2e1   :  { %3219 = vmatprep.subr.bf16.mxu1 %v3492_v10  ;;  %v3548_v10 = vcombine.high %v1466_v30, %v1470_v6  ;;  %v1514_v62 = vld [vmem:[#allocation10 + $0x3d8] sm:$0xff] }
 0x2e2   :  { %v1518_v0 = vld [vmem:[#allocation10 + $0x3f8] sm:$0xff] }
 0x2e3   :  { %3138 = vmatpush1.bf16.msra.mxu0 %v3489_v24  ;;  %v3545_v24 = vcombine.low %v1465_v58, %v1469_v59  ;;  %v1521_v58 = vld [vmem:[#allocation10 + $0x410] sm:$0xff] }
 0x2e4   :  { %3220 = vmatpush1.bf16.msra.mxu1 %v3491_v18  ;;  %3139 = vmatprep.subr.bf16.mxu0 %v3498_v25  ;;  %v3547_v18 = vcombine.low %v1466_v30, %v1470_v6  ;;  %v3554_v25 = vcombine.high %v1473_v12, %v1477_v20  ;;  %v1525_v59 = vld [vmem:[#allocation10 + $0x430] sm:$0xff]  ;;  %v1522_v30 = vld [vmem:[#allocation10 + $0x418] sm:$0xff] }
 0x2e5   :  { %3221 = vmatprep.subr.bf16.mxu1 %v3500_v22  ;;  %v3556_v22 = vcombine.high %v1474_v21, %v1478_v13  ;;  %v1526_v6 = vld [vmem:[#allocation10 + $0x438] sm:$0xff] }
 0x2e7   :  { %3140 = vmatpush1.bf16.msra.mxu0 %v3497_v28  ;;  %v3553_v28 = vcombine.low %v1473_v12, %v1477_v20  ;;  %v1529_v12 = vld [vmem:[#allocation10 + $0x450] sm:$0xff] }
 0x2e8   :  { %3222 = vmatpush1.bf16.msra.mxu1 %v3499_v31  ;;  %3141 = vmatprep.subr.bf16.mxu0 %v3506_v33  ;;  %v3555_v31 = vcombine.low %v1474_v21, %v1478_v13  ;;  %v3562_v33 = vcombine.high %v1481_v26, %v1485_v23  ;;  %v1533_v20 = vld [vmem:[#allocation10 + $0x470] sm:$0xff]  ;;  %v3601_v21 = vcombine.low %v1521_v58, %v1525_v59  ;;  %v1530_v13 = vld [vmem:[#allocation10 + $0x458] sm:$0xff] }
 0x2e9   :  { %3223 = vmatprep.subr.bf16.mxu1 %v3508_v34  ;;  %v3564_v34 = vcombine.high %v1482_v42, %v1486_v27 }
 0x2eb   :  { %3142 = vmatpush1.bf16.msra.mxu0 %v3505_v37  ;;  %v3561_v37 = vcombine.low %v1481_v26, %v1485_v23  ;;  %v1541_v26 = vld [vmem:[#allocation10 + $0x4b0] sm:$0xff] }
 0x2ec   :  { %3224 = vmatpush1.bf16.msra.mxu1 %v3507_v38  ;;  %3143 = vmatprep.subr.bf16.mxu0 %v3514_v3  ;;  %v3563_v38 = vcombine.low %v1482_v42, %v1486_v27  ;;  %v3570_v3 = vcombine.high %v1489_v63, %v1493_v35  ;;  %v1538_v42 = vld [vmem:[#allocation10 + $0x498] sm:$0xff] }
 0x2ed   :  { %3225 = vmatprep.subr.bf16.mxu1 %v3516_v39  ;;  %v3572_v39 = vcombine.high %v1490_v36, %v1494_v11  ;;  %v1542_v27 = vld [vmem:[#allocation10 + $0x4b8] sm:$0xff] }
 0x2ef   :  { %3144 = vmatpush1.bf16.msra.mxu0 %v3513_v44  ;;  %v3569_v44 = vcombine.low %v1489_v63, %v1493_v35  ;;  %v1545_v63 = vld [vmem:[#allocation10 + $0x4d0] sm:$0xff] }
 0x2f0   :  { %3226 = vmatpush1.bf16.msra.mxu1 %v3515_v45  ;;  %3145 = vmatprep.subr.bf16.mxu0 %v3522_v16  ;;  %v3571_v45 = vcombine.low %v1490_v36, %v1494_v11  ;;  %v3578_v16 = vcombine.high %v1497_v40, %v1501_v41  ;;  %v1549_v35 = vld [vmem:[#allocation10 + $0x4f0] sm:$0xff]  ;;  %v1546_v36 = vld [vmem:[#allocation10 + $0x4d8] sm:$0xff] }
 0x2f1   :  { %3227 = vmatprep.subr.bf16.mxu1 %v3524_v46  ;;  %v3580_v46 = vcombine.high %v1498_v4, %v1502_v5  ;;  %v1550_v11 = vld [vmem:[#allocation10 + $0x4f8] sm:$0xff] }
 0x2f3   :  { %3146 = vmatpush1.bf16.msra.mxu0 %v3521_v51  ;;  %v3577_v51 = vcombine.low %v1497_v40, %v1501_v41  ;;  %v1557_v40 = vld [vmem:[#allocation10 + $0x530] sm:$0xff]  ;;  %v1554_v41 = vld [vmem:[#allocation10 + $0x518] sm:$0xff] }
 0x2f4   :  { %3228 = vmatpush1.bf16.msra.mxu1 %v3523_v52  ;;  %3147 = vmatprep.subr.bf16.mxu0 %v3530_v53  ;;  %v3579_v52 = vcombine.low %v1498_v4, %v1502_v5  ;;  %v3586_v53 = vcombine.high %v1505_v48, %v1509_v49  ;;  %v1558_v4 = vld [vmem:[#allocation10 + $0x538] sm:$0xff]  ;;  %v3627_v5 = vcombine.low %v1546_v36, %v1550_v11 }
 0x2f5   :  { %3229 = vmatprep.subr.bf16.mxu1 %v3532_v54  ;;  %v3588_v54 = vcombine.high %v1506_v29, %v1510_v50 }
 0x2f7   :  { %3148 = vmatpush1.bf16.msra.mxu0 %v3529_v1  ;;  %v3585_v1 = vcombine.low %v1505_v48, %v1509_v49  ;;  %v1562_v48 = vld [vmem:[#allocation10 + $0x558] sm:$0xff] }
 0x2f8   :  { %3230 = vmatpush1.bf16.msra.mxu1 %v3531_v55  ;;  %3149 = vmatprep.subr.bf16.mxu0 %v3538_v56  ;;  %v3587_v55 = vcombine.low %v1506_v29, %v1510_v50  ;;  %v3594_v56 = vcombine.high %v1513_v60, %v1517_v61  ;;  %v1566_v49 = vld [vmem:[#allocation10 + $0x578] sm:$0xff]  ;;  %v3635_v50 = vcombine.low %v1554_v41, %v1558_v4 }
 0x2f9   :  { %3231 = vmatprep.subr.bf16.mxu1 %v3540_v57  ;;  %v3596_v57 = vcombine.high %v1514_v62, %v1518_v0 }
 0x2fb   :  { %3150 = vmatpush1.bf16.msra.mxu0 %v3537_v7  ;;  %v3593_v7 = vcombine.low %v1513_v60, %v1517_v61  ;;  %v1570_v60 = vld [vmem:[#allocation10 + $0x598] sm:$0xff] }
 0x2fc   :  { %3232 = vmatpush1.bf16.msra.mxu1 %v3539_v8  ;;  %3151 = vmatprep.subr.bf16.mxu0 %v3546_v9  ;;  %v3595_v8 = vcombine.low %v1514_v62, %v1518_v0  ;;  %v3602_v9 = vcombine.high %v1521_v58, %v1525_v59  ;;  %v1574_v61 = vld [vmem:[#allocation10 + $0x5b8] sm:$0xff]  ;;  %v3643_v0 = vcombine.low %v1562_v48, %v1566_v49 }
 0x2fd   :  { %3233 = vmatprep.subr.bf16.mxu1 %v3548_v10  ;;  %v3604_v10 = vcombine.high %v1522_v30, %v1526_v6  ;;  %v1578_v58 = vld [vmem:[#allocation10 + $0x5d8] sm:$0xff] }
 0x2fe   :  { %v1582_v59 = vld [vmem:[#allocation10 + $0x5f8] sm:$0xff] }
 0x2ff   :  { %3152 = vmatpush1.bf16.msra.mxu0 %v3545_v24  ;;  %v1534_v24 = vld [vmem:[#allocation10 + $0x478] sm:$0xff] }
 0x300   :  { %3234 = vmatpush1.bf16.msra.mxu1 %v3547_v18  ;;  %3153 = vmatprep.subr.bf16.mxu0 %v3554_v25  ;;  %v3603_v18 = vcombine.low %v1522_v30, %v1526_v6  ;;  %v3610_v25 = vcombine.high %v1529_v12, %v1533_v20  ;;  %v3612_v23 = vcombine.high %v1530_v13, %v1534_v24 }
 0x301   :  { %3235 = vmatprep.subr.bf16.mxu1 %v3556_v22  ;;  %v1537_v22 = vld [vmem:[#allocation10 + $0x490] sm:$0xff]  ;;  %v3651_v6 = vcombine.low %v1570_v60, %v1574_v61 }
 0x303   :  { %3154 = vmatpush1.bf16.msra.mxu0 %v3553_v28  ;;  %v3609_v28 = vcombine.low %v1529_v12, %v1533_v20  ;;  %v1586_v12 = vld [vmem:[#allocation10 + $0x618] sm:$0xff] }
 0x304   :  { %3236 = vmatpush1.bf16.msra.mxu1 %v3555_v31  ;;  %3155 = vmatprep.subr.bf16.mxu0 %v3562_v33  ;;  %v3611_v31 = vcombine.low %v1530_v13, %v1534_v24  ;;  %v3618_v33 = vcombine.high %v1537_v22, %v1541_v26  ;;  %v1590_v20 = vld [vmem:[#allocation10 + $0x638] sm:$0xff]  ;;  %v3659_v13 = vcombine.low %v1578_v58, %v1582_v59 }
 0x305   :  { %3237 = vmatprep.subr.bf16.mxu1 %v3564_v34  ;;  %v3620_v34 = vcombine.high %v1538_v42, %v1542_v27 }
 0x307   :  { %3156 = vmatpush1.bf16.msra.mxu0 %v3561_v37  ;;  %v3617_v37 = vcombine.low %v1537_v22, %v1541_v26  ;;  %v1597_v22 = vld [vmem:[#allocation10 + $0x670] sm:$0xff]  ;;  %v1594_v26 = vld [vmem:[#allocation10 + $0x658] sm:$0xff] }
 0x308   :  { %3238 = vmatpush1.bf16.msra.mxu1 %v3563_v38  ;;  %3157 = vmatprep.subr.bf16.mxu0 %v3570_v3  ;;  %v3626_v38 = vcombine.high %v1545_v63, %v1549_v35  ;;  %v3628_v3 = vcombine.high %v1546_v36, %v1550_v11 }
 0x309   :  { %3239 = vmatprep.subr.bf16.mxu1 %v3572_v39  ;;  %v1553_v39 = vld [vmem:[#allocation10 + $0x510] sm:$0xff] }
 0x30a   :  { %v3633_v29 = vcombine.low %v1553_v39, %v1557_v40 }
 0x30b   :  { %3158 = vmatpush1.bf16.msra.mxu0 %v3569_v44  ;;  %v3634_v44 = vcombine.high %v1553_v39, %v1557_v40  ;;  %v1610_v39 = vld [vmem:[#allocation10 + $0x6d8] sm:$0xff] }
 0x30c   :  { %3240 = vmatpush1.bf16.msra.mxu1 %v3571_v45  ;;  %3159 = vmatprep.subr.bf16.mxu0 %v3578_v16  ;;  %v3636_v45 = vcombine.high %v1554_v41, %v1558_v4  ;;  %v1561_v16 = vld [vmem:[#allocation10 + $0x550] sm:$0xff]  ;;  %v1614_v40 = vld [vmem:[#allocation10 + $0x6f8] sm:$0xff] }
 0x30d   :  { %3241 = vmatprep.subr.bf16.mxu1 %v3580_v46  ;;  %v1565_v46 = vld [vmem:[#allocation10 + $0x570] sm:$0xff] }
 0x30e   :  { %v3641_v62 = vcombine.low %v1561_v16, %v1565_v46 }
 0x30f   :  { %3160 = vmatpush1.bf16.msra.mxu0 %v3577_v51  ;;  %v3642_v51 = vcombine.high %v1561_v16, %v1565_v46  ;;  %v1618_v16 = vld [vmem:[#allocation10 + $0x718] sm:$0xff] }
 0x310   :  { %3242 = vmatpush1.bf16.msra.mxu1 %v3579_v52  ;;  %3161 = vmatprep.subr.bf16.mxu0 %v3586_v53  ;;  %v3644_v52 = vcombine.high %v1562_v48, %v1566_v49  ;;  %v1569_v53 = vld [vmem:[#allocation10 + $0x590] sm:$0xff]  ;;  %v1622_v46 = vld [vmem:[#allocation10 + $0x738] sm:$0xff]  ;;  %v3691_v49 = vcombine.low %v1610_v39, %v1614_v40 }
 0x311   :  { %3243 = vmatprep.subr.bf16.mxu1 %v3588_v54  ;;  %v1573_v54 = vld [vmem:[#allocation10 + $0x5b0] sm:$0xff] }
 0x312   :  { %v3649_v30 = vcombine.low %v1569_v53, %v1573_v54 }
 0x313   :  { %3162 = vmatpush1.bf16.msra.mxu0 %v3585_v1  ;;  %v3650_v1 = vcombine.high %v1569_v53, %v1573_v54  ;;  %v1626_v53 = vld [vmem:[#allocation10 + $0x758] sm:$0xff] }
 0x314   :  { %3244 = vmatpush1.bf16.msra.mxu1 %v3587_v55  ;;  %3163 = vmatprep.subr.bf16.mxu0 %v3594_v56  ;;  %v3652_v55 = vcombine.high %v1570_v60, %v1574_v61  ;;  %v1577_v56 = vld [vmem:[#allocation10 + $0x5d0] sm:$0xff]  ;;  %v1630_v54 = vld [vmem:[#allocation10 + $0x778] sm:$0xff]  ;;  %v3699_v61 = vcombine.low %v1618_v16, %v1622_v46 }
 0x315   :  { %3245 = vmatprep.subr.bf16.mxu1 %v3596_v57  ;;  %v1581_v57 = vld [vmem:[#allocation10 + $0x5f0] sm:$0xff] }
 0x317   :  { %3164 = vmatpush1.bf16.msra.mxu0 %v3593_v7  ;;  %v3658_v7 = vcombine.high %v1577_v56, %v1581_v57 }
 0x318   :  { %3246 = vmatpush1.bf16.msra.mxu1 %v3595_v8  ;;  %3174 = vmatprep.subr.bf16.mxu0 %v3602_v9  ;;  %v3660_v8 = vcombine.high %v1578_v58, %v1582_v59  ;;  %v1585_v9 = vld [vmem:[#allocation10 + $0x610] sm:$0xff]  ;;  %v3707_v59 = vcombine.low %v1626_v53, %v1630_v54 }
 0x319   :  { %3256 = vmatprep.subr.bf16.mxu1 %v3604_v10  ;;  %v1589_v10 = vld [vmem:[#allocation10 + $0x630] sm:$0xff] }
 0x31a   :  { %3166 = vmatmul.mubr.bf16.vlgmr.msra.gmra.mrb[12].mxu0 %v4358_v43  ;;  %v3666_v24 = vcombine.high %v1585_v9, %v1589_v10 }
 0x31b   :  { %3248 = vmatmul.mubr.bf16.vlgmr.msra.gmra.mrb[12].mxu1 %v4358_v43  ;;  %3175 = vmatpush1.bf16.msra.mxu0 %v3601_v21  ;;  %v3619_v43 = vcombine.low %v1538_v42, %v1542_v27  ;;  %v3657_v21 = vcombine.low %v1577_v56, %v1581_v57  ;;  %v3665_v42 = vcombine.low %v1585_v9, %v1589_v10  ;;  %v1634_v56 = vld [vmem:[#allocation10 + $0x798] sm:$0xff] }
 0x31c   :  { %3206 = vmatprep.mubr.bf16.mxu0 %v4364_v47  ;;  %3257 = vmatpush1.bf16.msra.mxu1 %v3603_v18  ;;  %v3668_v18 = vcombine.high %v1586_v12, %v1590_v20  ;;  %v3667_v27 = vcombine.low %v1586_v12, %v1590_v20  ;;  %v1638_v57 = vld [vmem:[#allocation10 + $0x7b8] sm:$0xff] }
 0x31d   :  { %3288 = vmatprep.mubr.bf16.mxu1 %v4364_v47  ;;  %3176 = vmatprep.subr.bf16.mxu0 %v3610_v25  ;;  %v3625_v47 = vcombine.low %v1545_v63, %v1549_v35  ;;  %v1593_v25 = vld [vmem:[#allocation10 + $0x650] sm:$0xff]  ;;  %v1602_v63 = vld [vmem:[#allocation10 + $0x698] sm:$0xff]  ;;  %v3715_v20 = vcombine.low %v1634_v56, %v1638_v57 }
 0x31e   :  { %3258 = vmatprep.subr.bf16.mxu1 %v3612_v23  ;;  %v1598_v23 = vld [vmem:[#allocation10 + $0x678] sm:$0xff]  ;;  %v3673_v36 = vcombine.low %v1593_v25, %v1597_v22 }
 0x31f   :  { %3177 = vmatpush1.bf16.msra.mxu0 %v3609_v28  ;;  %v3674_v28 = vcombine.high %v1593_v25, %v1597_v22  ;;  %v1606_v35 = vld [vmem:[#allocation10 + $0x6b8] sm:$0xff]  ;;  %v3675_v11 = vcombine.low %v1594_v26, %v1598_v23 }
 0x320   :  { %3259 = vmatpush1.bf16.msra.mxu1 %v3611_v31  ;;  %3178 = vmatprep.subr.bf16.mxu0 %v3618_v33  ;;  %v3676_v31 = vcombine.high %v1594_v26, %v1598_v23  ;;  %v1601_v33 = vld [vmem:[#allocation10 + $0x690] sm:$0xff]  ;;  %v3683_v4 = vcombine.low %v1602_v63, %v1606_v35  ;;  %v1642_v9 = vld [vmem:[#allocation10 + $0x7d8] sm:$0xff] }
 0x321   :  { %3260 = vmatprep.subr.bf16.mxu1 %v3620_v34  ;;  %v1605_v34 = vld [vmem:[#allocation10 + $0x6b0] sm:$0xff]  ;;  %v1646_v10 = vld [vmem:[#allocation10 + $0x7f8] sm:$0xff] }
 0x322   :  { %v3681_v41 = vcombine.low %v1601_v33, %v1605_v34  ;;  %v1647_v25 = vld [vmem:[%s4419_s8] sm:$0xff]  ;;  %s4152_s8 = smov [#allocation11]  }
 0x323   :  { %3179 = vmatpush1.bf16.msra.mxu0 %v3617_v37  ;;  %v3682_v37 = vcombine.high %v1601_v33, %v1605_v34  ;;  %v1652_v22 = vrot.slane %v1647_v25, %v4272_v15  ;;  %v1660_v26 = vrot.slane %v1647_v25, %v4294_v32  ;;  %v1656_v23 = vrot.slane %v1647_v25, %v4280_v17  ;;  %s3319_s12 = sshll.u32 %s4152_s8, 4  ;;  %s3320_s12 = int_to_ptr.vmem [resolvable:$true] %s3319_s12 }
 0x324   :  { %3261 = vmatpush1.bf16.msra.mxu1 %v3619_v43  ;;  %3180 = vmatprep.subr.bf16.mxu0 %v3626_v38  ;;  %v3684_v43 = vcombine.high %v1602_v63, %v1606_v35  ;;  %v1609_v38 = vld [vmem:[#allocation10 + $0x6d0] sm:$0xff]  ;;  %s4111_s13 = scalar_lea.vmem %s3320_s12, 1024  ;;  %p4116_p13 = scmp.lt.s32.totalorder %s3320_s12, %s3320_s12 }
 0x325   :  { %3262 = vmatprep.subr.bf16.mxu1 %v3628_v3  ;;  %v1613_v3 = vld [vmem:[#allocation10 + $0x6f0] sm:$0xff]  ;;  %p4112_p12 = scmp.ne.s32.totalorder %s3320_s12, %s4111_s13  ;;  %p4117_p0 = scmp.lt.s32.totalorder %s4111_s13, %s4111_s13 }
 0x326   :  { %v3689_v48 = vcombine.low %v1609_v38, %v1613_v3 }
 0x327   :  { %3181 = vmatpush1.bf16.msra.mxu0 %v3625_v47  ;;  %v3690_v47 = vcombine.high %v1609_v38, %v1613_v3  ;;  %v1667_v38 = vsub.s32 4, %v4269_v14  ;;  %v1675_v3 = vsub.s32 6, %v4269_v14  ;;  %p4118_p1 = por %p4117_p0, %p4116_p13 }
 0x328   :  { %3263 = vmatpush1.bf16.msra.mxu1 %v3627_v5  ;;  %3182 = vmatprep.subr.bf16.mxu0 %v3634_v44  ;;  %v3692_v5 = vcombine.high %v1610_v39, %v1614_v40  ;;  %v1617_v44 = vld [vmem:[#allocation10 + $0x710] sm:$0xff]  ;;  %v1671_v39 = vsub.s32 5, %v4269_v14  ;;  %v1679_v40 = vsub.s32 7, %v4269_v14 }
 0x329   :  { %3264 = vmatprep.subr.bf16.mxu1 %v3636_v45  ;;  %v1621_v45 = vld [vmem:[#allocation10 + $0x730] sm:$0xff]  ;;  %p4119_p2 = pnand %p4118_p1, %p4112_p12 }
 0x32a   :  { %v3697_v60 = vcombine.low %v1617_v44, %v1621_v45 }
 0x32b   :  { %3183 = vmatpush1.bf16.msra.mxu0 %v3633_v29  ;;  %v3698_v29 = vcombine.high %v1617_v44, %v1621_v45 }
 0x32c   :  { %3265 = vmatpush1.bf16.msra.mxu1 %v3635_v50  ;;  %3184 = vmatprep.subr.bf16.mxu0 %v3642_v51  ;;  %v3700_v50 = vcombine.high %v1618_v16, %v1622_v46  ;;  %v1625_v51 = vld [vmem:[#allocation10 + $0x750] sm:$0xff] }
 0x32d   :  { %3266 = vmatprep.subr.bf16.mxu1 %v3644_v52  ;;  %v1629_v52 = vld [vmem:[#allocation10 + $0x770] sm:$0xff] }
 0x32e   :  { %v3705_v58 = vcombine.low %v1625_v51, %v1629_v52 }
 0x32f   :  { %3185 = vmatpush1.bf16.msra.mxu0 %v3641_v62  ;;  %v3706_v62 = vcombine.high %v1625_v51, %v1629_v52 }
 0x330   :  { %3267 = vmatpush1.bf16.msra.mxu1 %v3643_v0  ;;  %3186 = vmatprep.subr.bf16.mxu0 %v3650_v1  ;;  %v3708_v0 = vcombine.high %v1626_v53, %v1630_v54  ;;  %v1633_v1 = vld [vmem:[#allocation10 + $0x790] sm:$0xff] }
 0x331   :  { %3268 = vmatprep.subr.bf16.mxu1 %v3652_v55  ;;  %v1637_v55 = vld [vmem:[#allocation10 + $0x7b0] sm:$0xff] }
 0x332   :  { %v3713_v12 = vcombine.low %v1633_v1, %v1637_v55 }
 0x333   :  { %3187 = vmatpush1.bf16.msra.mxu0 %v3649_v30  ;;  %v3714_v30 = vcombine.high %v1633_v1, %v1637_v55 }
 0x334   :  { %3269 = vmatpush1.bf16.msra.mxu1 %v3651_v6  ;;  %3188 = vmatprep.subr.bf16.mxu0 %v3658_v7  ;;  %v3716_v6 = vcombine.high %v1634_v56, %v1638_v57  ;;  %v1641_v7 = vld [vmem:[#allocation10 + $0x7d0] sm:$0xff] }
 0x335   :  { %3270 = vmatprep.subr.bf16.mxu1 %v3660_v8  ;;  %v1645_v8 = vld [vmem:[#allocation10 + $0x7f0] sm:$0xff] }
 0x337   :  { %3189 = vmatpush1.bf16.msra.mxu0 %v3657_v21  ;;  %v3722_v21 = vcombine.high %v1641_v7, %v1645_v8 }
 0x338   :  { %3271 = vmatpush1.bf16.msra.mxu1 %v3659_v13  ;;  %3190 = vmatprep.subr.bf16.mxu0 %v3666_v24  ;;  %v3724_v13 = vcombine.high %v1642_v9, %v1646_v10  ;;  %v3721_v24 = vcombine.low %v1641_v7, %v1645_v8 }
 0x339   :  { %3272 = vmatprep.subr.bf16.mxu1 %v3668_v18  ;;  %v3723_v18 = vcombine.low %v1642_v9, %v1646_v10 }
 0x33b   :  { %3191 = vmatpush1.bf16.msra.mxu0 %v3665_v42  ;;  %v1664_v42 = vrot.slane %v1647_v25, %v4285_v19 }
 0x33c   :  { %3273 = vmatpush1.bf16.msra.mxu1 %v3667_v27  ;;  %3192 = vmatprep.subr.bf16.mxu0 %v3674_v28 }
 0x33d   :  { %3274 = vmatprep.subr.bf16.mxu1 %v3676_v31 }
 0x33f   :  { %3193 = vmatpush1.bf16.msra.mxu0 %v3673_v36 }
 0x340   :  { %3275 = vmatpush1.bf16.msra.mxu1 %v3675_v11  ;;  %3194 = vmatprep.subr.bf16.mxu0 %v3682_v37 }
 0x341   :  { %3276 = vmatprep.subr.bf16.mxu1 %v3684_v43 }
 0x343   :  { %3195 = vmatpush1.bf16.msra.mxu0 %v3681_v41  ;;  %v1668_v41 = vrot.slane %v1647_v25, %v1667_v38 }
 0x344   :  { %3277 = vmatpush1.bf16.msra.mxu1 %v3683_v4  ;;  %3196 = vmatprep.subr.bf16.mxu0 %v3690_v47  ;;  %v1676_v4 = vrot.slane %v1647_v25, %v1675_v3  ;;  %v1672_v47 = vrot.slane %v1647_v25, %v1671_v39 }
 0x345   :  { %3278 = vmatprep.subr.bf16.mxu1 %v3692_v5  ;;  %v1680_v5 = vrot.slane %v1647_v25, %v1679_v40 }
 0x347   :  { %3197 = vmatpush1.bf16.msra.mxu0 %v3689_v48 }
 0x348   :  { %3279 = vmatpush1.bf16.msra.mxu1 %v3691_v49  ;;  %3198 = vmatprep.subr.bf16.mxu0 %v3698_v29 }
 0x349   :  { %3280 = vmatprep.subr.bf16.mxu1 %v3700_v50 }
 0x34b   :  { %3199 = vmatpush1.bf16.msra.mxu0 %v3697_v60 }
 0x34c   :  { %3281 = vmatpush1.bf16.msra.mxu1 %v3699_v61  ;;  %3200 = vmatprep.subr.bf16.mxu0 %v3706_v62 }
 0x34d   :  { %3282 = vmatprep.subr.bf16.mxu1 %v3708_v0 }
 0x34f   :  { %3201 = vmatpush1.bf16.msra.mxu0 %v3705_v58 }
 0x350   :  { %3283 = vmatpush1.bf16.msra.mxu1 %v3707_v59  ;;  %3202 = vmatprep.subr.bf16.mxu0 %v3714_v30 }
 0x351   :  { %3284 = vmatprep.subr.bf16.mxu1 %v3716_v6 }
 0x353   :  { %3203 = vmatpush1.bf16.msra.mxu0 %v3713_v12 }
 0x354   :  { %3285 = vmatpush1.bf16.msra.mxu1 %v3715_v20  ;;  %3204 = vmatprep.subr.bf16.mxu0 %v3722_v21 }
 0x355   :  { %3286 = vmatprep.subr.bf16.mxu1 %v3724_v13 }
 0x357   :  { %3205 = vmatpush1.bf16.msra.mxu0 %v3721_v24 }
 0x358   :  { %3287 = vmatpush1.bf16.msra.mxu1 %v3723_v18 }
 0x35a   :  { %3207 = vmatmul.mubr.bf16.vlgmr.msra.gmra.mrb[12].mxu0 %v4376_v2 }
 0x35b   :  { %3289 = vmatmul.mubr.bf16.vlgmr.msra.gmra.mrb[12].mxu1 %v4376_v2 }
 0x3ad   :  { %v3044_v27 = vpop.f32.mrb[8].mxu0  ;;  %v3126_v28 = vpop.f32.mrb[8].mxu1 }
 0x3ae   :  { %v3729_v31 = vadd.f32 %v3044_v27, %v1652_v22  ;;  %v3731_v33 = vadd.f32 %v3126_v28, %v1660_v26  ;;  %v3046_v34 = vpop.f32.mrb[9].mxu0  ;;  %v3128_v63 = vpop.f32.mrb[9].mxu1 }
 0x3af   :  { %v3730_v35 = vadd.f32 %v3046_v34, %v1656_v23  ;;  %v3732_v2 = vadd.f32 %v3128_v63, %v1664_v42  ;;  %v3048_v36 = vpop.f32.mrb[10].mxu0  ;;  %v3130_v11 = vpop.f32.mrb[10].mxu1 }
 0x3b0   :  { %3985 = vtanh.f32 %v3729_v31  ;;  %v3049_v37 = vpop.f32.mrb[11].mxu0  ;;  %v3131_v43 = vpop.f32.mrb[11].mxu1 }
 0x3b1   :  { %3987 = vtanh.f32 %v3731_v33 }
 0x3b2   :  { %3989 = vtanh.f32 %v3730_v35 }
 0x3b3   :  { %3991 = vtanh.f32 %v3732_v2 }
 0x3ba   :  { %v3986_v15 = vpop.eup %3985 }
 0x3bb   :  { %v3988_v17 = vpop.eup %3987  ;;  %3305 = vst [vmem:[#allocation11] sm:$0xff] %v3986_v15 }
 0x3bc   :  { %v3990_v19 = vpop.eup %3989  ;;  %3307 = vst [vmem:[#allocation11 + $0x10] sm:$0xff] %v3988_v17 }
 0x3bd   :  { %v3992_v32 = vpop.eup %3991  ;;  %3306 = vst [vmem:[#allocation11 + $0x8] sm:$0xff] %v3990_v19 }
 0x3be   :  { %3308 = vst [vmem:[#allocation11 + $0x18] sm:$0xff] %v3992_v32 }
 0x42d   :  { %v3208_v44 = vpop.f32.mrb[12].mxu0 }
 0x42e   :  { %v3733_v45 = vadd.f32 %v3208_v44, %v1668_v41  ;;  %v3290_v16 = vpop.f32.mrb[12].mxu1  ;;  %v3210_v46 = vpop.f32.mrb[13].mxu0 }
 0x42f   :  { %v3735_v48 = vadd.f32 %v3290_v16, %v1676_v4  ;;  %v3734_v49 = vadd.f32 %v3210_v46, %v1672_v47  ;;  %v3292_v29 = vpop.f32.mrb[13].mxu1  ;;  %v3212_v50 = vpop.f32.mrb[14].mxu0 }
 0x430   :  { %3993 = vtanh.f32 %v3733_v45  ;;  %v3736_v51 = vadd.f32 %v3292_v29, %v1680_v5  ;;  %v3294_v52 = vpop.f32.mrb[14].mxu1  ;;  %v3213_v53 = vpop.f32.mrb[15].mxu0 }
 0x431   :  { %3995 = vtanh.f32 %v3735_v48  ;;  %v3295_v54 = vpop.f32.mrb[15].mxu1 }
 0x432   :  { %3997 = vtanh.f32 %v3734_v49 }
 0x433   :  { %3999 = vtanh.f32 %v3736_v51 }
 0x43a   :  { %v3994_v14 = vpop.eup %3993 }
 0x43b   :  { %v3996_v60 = vpop.eup %3995  ;;  %3309 = vst [vmem:[#allocation11 + $0x20] sm:$0xff] %v3994_v14 }
 0x43c   :  { %v3998_v61 = vpop.eup %3997  ;;  %3311 = vst [vmem:[#allocation11 + $0x30] sm:$0xff] %v3996_v60 }
 0x43d   :  { %v4000_v62 = vpop.eup %3999  ;;  %3310 = vst [vmem:[#allocation11 + $0x28] sm:$0xff] %v3998_v61 }
 0x43e   :  { %3312 = vst [vmem:[#allocation11 + $0x38] sm:$0xff] %v4000_v62 }
 0x43f   :  { %4122 = shalt.err (!%p4119_p2)
}
 0x440   :  { %s4123_s14 = scalar_lea.hbm %s4420_s9, 1024 }
 0x441   :  { %p4124_p3 = scmp.ne.s32.totalorder %s4420_s9, %s4123_s14  ;;  %p4127_p4 = scmp.lt.u32.totalorder %s4123_s14, %s4420_s9 }
 0x443   :  { %p4129_p5 = pnand %p4127_p4, %p4124_p3 }
 0x445   :  { %4132 = shalt.err (!%p4129_p5)
}
 0x446   :  { %3322 = dma.vmem_to_hbm [thread:$0]  %s3320_s12, 1024, %s4420_s9, [#allocation4]  }
 0x447   :  { %4139 = dma.done.wait [#allocation4], 1024  }
 0x448   :  { %4140 = vsyncadd [#allocation4], 4294966272 }
 0x449   :  { %3326 = vsyncpa [#allocation3], 1 }
 0x44a   :  { %3327 = vsyncpa [#allocation6], 1 }
 0x44b   :  { %3328 = vsyncpa [#allocation9], 1 }
 0x44c   :  { %3329 = vsyncpa [#allocation4], 1 }

</bundles_post_ra>
